<compile_context>
chip_gen: v7x
topology: tpu7x:2x2x1
jax: 0.10.0
libtpu: 0.0.40
codegen_flags: <defaults>
</compile_context>

<pallas_src>
import jax
import jax.numpy as jnp
from jax import lax
from jax.experimental import pallas as pl
from jax.experimental.pallas import tpu as pltpu


_LANE = 128
_VMEM_LIMIT = 48 * 1024 * 1024     # leaves headroom on v7x's 64 MiB physical VMEM


def _round_up(x, m):
    return ((x + m - 1) // m) * m


def _pick_tile(n, preferred=512):
    """Largest tile <= preferred dividing n; steps in multiples of 16 (bf16
    sublane packing), then 8, then falls back to n itself."""
    if n <= preferred:
        return n
    for t in range(preferred - preferred % 16, 15, -16):
        if n % t == 0:
            return t
    for t in range(preferred - preferred % 8, 7, -8):
        if n % t == 0:
            return t
    # TODO(synk): mask ragged row tiles instead of falling back to tile == n.
    return n


# ----------------------------------------------------------------------------
# Kernel 1: fused pairwise distance + top-k neighbour selection.
# grid=(B, N//TM). The full (N, C) point block and (1, N) squared norms are
# constant across the row-tile axis, so Pallas DMAs them once per batch; the
# row tile is sliced out of the resident block in-kernel (no duplicate DMA).
# The (TM, N) distance slab lives only in a VMEM scratch; only (TM, k) int32
# indices are written back to HBM.
# ----------------------------------------------------------------------------
def _knn_kernel(x_ref, sqall_ref, idx_ref, dist_ref):
    # x_ref:     (1, N, C)  bf16   all points of this batch
    # sqall_ref: (1, 1, N)  f32    ||x_j||^2 for every point
    # idx_ref:   (1, TM, K) int32  output: K nearest-neighbour indices per row
    # dist_ref:  (TM, N)    f32    VMEM scratch (distance slab for this row tile)
    tm, n = dist_ref.shape
    k = idx_ref.shape[2]

    row0 = pl.multiple_of(pl.program_id(1) * tm, tm)
    xr = x_ref[0, pl.ds(row0, tm), :]                       # (TM, C) bf16
    xa = x_ref[0]                                           # (N,  C) bf16
    inner = lax.dot_general(xr, xa, (((1,), (1,)), ((), ())),
                            preferred_element_type=jnp.float32)   # (TM, N)
    xr32 = xr.astype(jnp.float32)
    sq_r = jnp.sum(xr32 * xr32, axis=-1, keepdims=True)     # (TM, 1)
    # -||xi - xj||^2 == 2*xi.xj - ||xi||^2 - ||xj||^2  (largest == nearest)
    dist_ref[...] = 2.0 * inner - sq_r - sqall_ref[0]

    # Iterative top-k: extract the max k times, masking the winner each round.
    # Index bookkeeping is done in f32 (exact for N < 2^24) to stay on the
    # well-trodden f32 lane-reduction path; tie-break = lowest index (matches
    # lax.top_k / the reference).
    col_i = lax.broadcasted_iota(jnp.int32, (tm, n), 1)
    col_f = col_i.astype(jnp.float32)
    kcol = lax.broadcasted_iota(jnp.int32, (tm, k), 1)
    out_idx = jnp.zeros((tm, k), jnp.int32)
    for j in range(k):                                      # k is small & static
        d = dist_ref[...]
        mval = jnp.max(d, axis=-1, keepdims=True)           # (TM, 1)
        amax_f = jnp.min(jnp.where(d == mval, col_f, float(n)),
                         axis=-1, keepdims=True)            # (TM, 1) f32 (exact int)
        amax_i = amax_f.astype(jnp.int32)
        out_idx = jnp.where(kcol == j, amax_i, out_idx)
        if j + 1 < k:
            dist_ref[...] = jnp.where(col_f == amax_f, -jnp.inf, d)
    idx_ref[0] = out_idx


def knn_indices(feats, k, tile_m):
    """feats: (B, N, C) bf16 -> (B, N, k) int32 nearest-neighbour indices."""
    B, N, C = feats.shape
    f32 = feats.astype(jnp.float32)
    sqall = jnp.sum(f32 * f32, axis=-1)[:, None, :]         # (B, 1, N) f32
    return pl.pallas_call(
        _knn_kernel,
        out_shape=jax.ShapeDtypeStruct((B, N, k), jnp.int32),
        grid=(B, N // tile_m),
        in_specs=[
            # TODO(synk): single-buffer these constant-index blocks
            # (pipeline_mode=pl.Buffered(1)) to free VMEM on v7x.
            pl.BlockSpec((1, N, C), lambda b, m: (b, 0, 0)),      # all points
            pl.BlockSpec((1, 1, N), lambda b, m: (b, 0, 0)),      # all squared norms
        ],
        out_specs=pl.BlockSpec((1, tile_m, k), lambda b, m: (b, m, 0)),
        scratch_shapes=[pltpu.VMEM((tile_m, N), jnp.float32)],
        compiler_params=pltpu.CompilerParams(
            dimension_semantics=("parallel", "parallel"),
            vmem_limit_bytes=_VMEM_LIMIT),
    )(feats, sqall)


# ----------------------------------------------------------------------------
# Kernel 2: fused edge-conv, tiled over N: grid=(B, N//TN)
#   edge = concat(neigh - center, center);  y = LReLU(BN(edge @ W^T));  max over K
# Rewritten exactly (BN scale folded into weights, LReLU hoisted past the max):
#   out = LeakyReLU( max_k( neigh_k @ Wtop_s ) + cent @ Wdiff_s + bias )
# All K neighbour matmuls are one MXU matmul over (K*TN, C).
# ----------------------------------------------------------------------------
def _edgeconv_kernel(neigh_ref, cent_ref, w_top_ref, w_diff_ref, bias_ref, out_ref):
    # neigh_ref: (1, K, TN, C) bf16   cent_ref: (1, TN, C) bf16
    # w_top/w_diff: (C, Cop) bf16 (BN scale folded)   bias: (1, Cop) f32
    K = neigh_ref.shape[1]
    TN = neigh_ref.shape[2]
    C = neigh_ref.shape[3]
    # One RHS load streamed past K*TN LHS rows (TN is a multiple of the bf16
    # sublane tile, so merging the leading dims is layout-free).
    t = jnp.dot(neigh_ref[0].reshape(K * TN, C), w_top_ref[...],
                preferred_element_type=jnp.float32)          # (K*TN, Cop) f32
    m = t[0:TN]
    for j in range(1, K):                                    # K small & static
        m = jnp.maximum(m, t[j * TN:(j + 1) * TN])
    cterm = jnp.dot(cent_ref[0], w_diff_ref[...],
                    preferred_element_type=jnp.float32) + bias_ref[...]   # (TN, Cop)
    y = m + cterm
    out_ref[0] = jnp.maximum(y, 0.2 * y).astype(out_ref.dtype)   # LeakyReLU after max


def edge_conv(neigh, cent, w_top, w_diff, bias, tile_n):
    """neigh: (B, K, N, C) bf16, cent: (B, N, C) bf16 -> (B, N, Cop) bf16."""
    B, K, N, C = neigh.shape
    Cop = w_top.shape[1]
    return pl.pallas_call(
        _edgeconv_kernel,
        out_shape=jax.ShapeDtypeStruct((B, N, Cop), jnp.bfloat16),
        grid=(B, N // tile_n),
        in_specs=[
            pl.BlockSpec((1, K, tile_n, C), lambda b, m: (b, 0, m, 0)),
            pl.BlockSpec((1, tile_n, C), lambda b, m: (b, m, 0)),
            pl.BlockSpec((C, Cop), lambda b, m: (0, 0)),
            pl.BlockSpec((C, Cop), lambda b, m: (0, 0)),
            pl.BlockSpec((1, Cop), lambda b, m: (0, 0)),
        ],
        out_specs=pl.BlockSpec((1, tile_n, Cop), lambda b, m: (b, m, 0)),
        compiler_params=pltpu.CompilerParams(
            dimension_semantics=("parallel", "parallel"),
            vmem_limit_bytes=_VMEM_LIMIT),
    )(neigh, cent, w_top, w_diff, bias)


# ----------------------------------------------------------------------------
# Parameter folding: eval-mode BN -> scale/bias, scale folded into bf16 weights,
# zero-padding of input channels (to the current padded feature width) and of
# output channels (to a multiple of 128 for lane-dense stores).
# ----------------------------------------------------------------------------
def _prep_layer(w, scale, bias, c_in_pad):
    """w: (Co, 2C) conv weight, scale/bias: (Co,) folded BN affine.

    edge @ W^T = (neigh - cent) @ W_top + cent @ W_bot
               = neigh @ W_top + cent @ (W_bot - W_top)
    Returns (w_top_scaled_bf16, w_diff_scaled_bf16, bias_padded_f32, co_true).
    """
    co, two_c = w.shape
    c = two_c // 2
    wt = w.astype(jnp.float32).T                             # (2C, Co)
    s = scale.astype(jnp.float32)[None, :]
    w_top = wt[:c] * s
    w_bot = wt[c:] * s
    w_diff = w_bot - w_top
    co_pad = max(_LANE, _round_up(co, _LANE))
    w_top = jnp.pad(w_top.astype(jnp.bfloat16),
                    ((0, c_in_pad - c), (0, co_pad - co)))
    w_diff = jnp.pad(w_diff.astype(jnp.bfloat16),
                     ((0, c_in_pad - c), (0, co_pad - co)))
    bias_p = jnp.pad(bias.astype(jnp.float32), (0, co_pad - co)).reshape(1, co_pad)
    return w_top, w_diff, bias_p, co


# ----------------------------------------------------------------------------
# Full forward pass
# ----------------------------------------------------------------------------
def dgcnn_forward(x, params, k, tile_pref=512):
    """x: (B, N, input_dim) -- same input as the PyTorch module's forward.
    Returns (B, output_dim, N), matching the PyTorch output layout."""
    feats = x.astype(jnp.bfloat16)                           # (B, N, C) channels-last
    B, N, _ = feats.shape
    tn = _pick_tile(N, tile_pref)
    co_true = None
    for (w, scale, bias) in params:
        c_pad = feats.shape[-1]                              # current (padded) width
        w_top, w_diff, bias_p, co_true = _prep_layer(w, scale, bias, c_pad)
        # Fused pdist + top-k: only the small index tensor hits HBM.
        idx = knn_indices(feats, k, tn)                      # (B, N, k) int32  Pallas
        # Gather neighbours in bf16 as (B, K, N, C) (contiguous per-neighbor slabs).
        # TODO(synk): move the gather in-kernel (scalar-prefetched idx + DMA gather)
        # to avoid writing/re-reading the Kx-replicated neighbor tensor in HBM.
        neigh = jax.vmap(lambda xb, ib: xb[ib])(feats, jnp.swapaxes(idx, 1, 2))
        feats = edge_conv(neigh, feats, w_top, w_diff, bias_p, tn)   # (B, N, co_pad) bf16
    out = feats[:, :, :co_true].astype(jnp.float32)          # drop zero padding
    return jnp.transpose(out, (0, 2, 1))                     # (B, output_dim, N)


# ----------------------------------------------------------------------------
# Pure-JAX reference (no Pallas) for validation.
# Mirrors the folded-BN / bf16 numerics so kNN index selection matches, but
# applies LeakyReLU *before* the max (PyTorch order) via separate code.
# ----------------------------------------------------------------------------
def _forward_ref(x, params, k):
    feats = x.astype(jnp.bfloat16)
    co_true = None
    for (w, scale, bias) in params:
        c_pad = feats.shape[-1]
        w_top, w_diff, bias_p, co_true = _prep_layer(w, scale, bias, c_pad)
        f32 = feats.astype(jnp.float32)
        inner = jnp.einsum('bnc,bmc->bnm', feats, feats,
                           preferred_element_type=jnp.float32)
        sq = jnp.sum(f32 * f32, axis=-1)
        dist = 2.0 * inner - sq[:, :, None] - sq[:, None, :]
        idx = lax.top_k(dist, k)[1]
        neigh = jax.vmap(lambda xb, ib: xb[ib])(feats, jnp.swapaxes(idx, 1, 2))
        t = jnp.einsum('bknc,cf->bknf', neigh, w_top,
                       preferred_element_type=jnp.float32)
        cterm = jnp.einsum('bnc,cf->bnf', feats, w_diff,
                           preferred_element_type=jnp.float32) + bias_p
        y = t + cterm[:, None, :, :]
        y = jnp.where(y > 0, y, 0.2 * y)                     # LeakyReLU before max
        feats = jnp.max(y, axis=1).astype(jnp.bfloat16)
    out = feats[:, :, :co_true].astype(jnp.float32)
    return jnp.transpose(out, (0, 2, 1))


# ----------------------------------------------------------------------------
# Deterministic parameter construction (matches module __init__ shapes)
# ----------------------------------------------------------------------------
def make_params(key, input_dim, output_dim):
    layer_dims = [(2 * input_dim, 64), (2 * 64, 64), (2 * 64, 128),
                  (2 * 128, output_dim)]
    params = []
    eps = 1e-5
    for (ci2, co) in layer_dims:
        key, kw = jax.random.split(key)
        w = 0.1 * jax.random.normal(kw, (co, ci2), jnp.float32)   # Conv2d (Co,2C,1,1)->(Co,2C)
        # BatchNorm2d default init + eval-mode running stats, folded to affine.
        # TODO(synk): training-mode BatchNorm (batch statistics over B*N*K) is not
        # reproduced; only eval-mode BN is folded into per-channel scale/bias.
        gamma = jnp.ones((co,), jnp.float32)
        beta = jnp.zeros((co,), jnp.float32)
        run_mean = jnp.zeros((co,), jnp.float32)
        run_var = jnp.ones((co,), jnp.float32)
        scale = gamma / jnp.sqrt(run_var + eps)
        bias = beta - run_mean * scale
        params.append((w, scale, bias))
    return params


if __name__ == "__main__":
    B, N, INPUT_DIM, OUTPUT_DIM, K = 2, 16, 3, 3, 4

    key = jax.random.PRNGKey(0)
    key, kx = jax.random.split(key)
    x = jax.random.normal(kx, (B, N, INPUT_DIM), jnp.float32)
    params = make_params(key, INPUT_DIM, OUTPUT_DIM)

    fwd = jax.jit(lambda xx: dgcnn_forward(xx, params, K))
    out = jax.block_until_ready(fwd(x))

    ref = _forward_ref(x, params, K)
    assert out.shape == (B, OUTPUT_DIM, N), out.shape
    assert jnp.allclose(out, ref, atol=2e-2, rtol=2e-2), (
        float(jnp.max(jnp.abs(out - ref))))

    print("KERNEL_OK")
</pallas_src>

<mosaic_0001>
module attributes {stable_mosaic.version = 11 : i64} {
  func.func @_knn_kernel(%arg0: i32, %arg1: i32, %arg2: memref<1x16x3xbf16, #tpu.memory_space<vmem>>, %arg3: memref<1x1x16xf32, #tpu.memory_space<vmem>>, %arg4: memref<1x16x4xi32, #tpu.memory_space<vmem>>, %arg5: memref<16x16xf32, #tpu.memory_space<vmem>>) attributes {dimension_semantics = [#tpu.dimension_semantics<parallel>, #tpu.dimension_semantics<parallel>], iteration_bounds = array<i64: 2, 1>, scalar_prefetch = 0 : i64, scratch_operands = 1 : i64, tpu.core_type = #tpu.core_type<tc>, window_params = [{transform_indices = @transform_0, window_bounds = array<i64: 1, 16, 3>}, {transform_indices = @transform_1, window_bounds = array<i64: 1, 1, 16>}, {transform_indices = @transform_2, window_bounds = array<i64: 1, 16, 4>}]} {
    %c16_i32 = arith.constant 16 : i32
    %0 = arith.muli %arg1, %c16_i32 : i32
    %1 = tpu.assume_multiple %0, 16 : i32
    %c0 = arith.constant 0 : index
    %2 = arith.index_cast %1 : i32 to index
    %c0_0 = arith.constant 0 : index
    %3 = vector.load %arg2[%c0, %2, %c0_0] : memref<1x16x3xbf16, #tpu.memory_space<vmem>>, vector<1x16x3xbf16>
    %4 = vector.shape_cast %3 : vector<1x16x3xbf16> to vector<16x3xbf16>
    %c0_1 = arith.constant 0 : index
    %c0_2 = arith.constant 0 : index
    %c0_3 = arith.constant 0 : index
    %5 = vector.load %arg2[%c0_1, %c0_2, %c0_3] : memref<1x16x3xbf16, #tpu.memory_space<vmem>>, vector<1x16x3xbf16>
    %6 = vector.shape_cast %5 : vector<1x16x3xbf16> to vector<16x3xbf16>
    %cst = arith.constant dense<0.000000e+00> : vector<16x16xf32>
    %7 = tpu.matmul %4, %6, %cst {dimension_numbers = #tpu.dot_dimension_numbers<[1], [1], [0], [0], [0, 0, 1, 0], [], []>} : vector<16x3xbf16>, vector<16x3xbf16>, vector<16x16xf32> -> vector<16x16xf32>
    %8 = arith.extf %4 : vector<16x3xbf16> to vector<16x3xf32>
    %9 = arith.mulf %8, %8 : vector<16x3xf32>
    %cst_4 = arith.constant dense<0.000000e+00> : vector<16xf32>
    %10 = vector.multi_reduction <add>, %9, %cst_4 [1] : vector<16x3xf32> to vector<16xf32>
    %11 = vector.shape_cast %10 : vector<16xf32> to vector<16x1xf32>
    %cst_5 = arith.constant 2.000000e+00 : f32
    %12 = vector.broadcast %cst_5 : f32 to vector<16x16xf32>
    %13 = arith.mulf %12, %7 : vector<16x16xf32>
    %14 = vector.broadcast %11 : vector<16x1xf32> to vector<16x16xf32>
    %15 = arith.subf %13, %14 : vector<16x16xf32>
    %c0_6 = arith.constant 0 : index
    %c0_7 = arith.constant 0 : index
    %c0_8 = arith.constant 0 : index
    %16 = vector.load %arg3[%c0_6, %c0_7, %c0_8] : memref<1x1x16xf32, #tpu.memory_space<vmem>>, vector<1x1x16xf32>
    %17 = vector.shape_cast %16 : vector<1x1x16xf32> to vector<1x16xf32>
    %18 = vector.broadcast %17 : vector<1x16xf32> to vector<16x16xf32>
    %19 = arith.subf %15, %18 : vector<16x16xf32>
    %c0_9 = arith.constant 0 : index
    %c0_10 = arith.constant 0 : index
    %20 = vector.load %arg5[%c0_9, %c0_10] : memref<16x16xf32, #tpu.memory_space<vmem>>, vector<16x16xf32>
    tpu.vector_store %arg5[%c0_9, %c0_10], %19 {strides = array<i32>} : memref<16x16xf32, #tpu.memory_space<vmem>>, vector<16x16xf32>,
    %21 = tpu.iota {dimensions = array<i32: 1>} : vector<16x16xi32>
    %22 = arith.sitofp %21 : vector<16x16xi32> to vector<16x16xf32>
    %23 = tpu.iota {dimensions = array<i32: 1>} : vector<16x4xi32>
    %c0_i32 = arith.constant 0 : i32
    %24 = vector.broadcast %c0_i32 : i32 to vector<16x4xi32>
    %c0_11 = arith.constant 0 : index
    %c0_12 = arith.constant 0 : index
    %25 = vector.load %arg5[%c0_11, %c0_12] : memref<16x16xf32, #tpu.memory_space<vmem>>, vector<16x16xf32>
    %cst_13 = arith.constant dense<0xFF800000> : vector<16xf32>
    %26 = vector.multi_reduction <maximumf>, %25, %cst_13 [1] : vector<16x16xf32> to vector<16xf32>
    %27 = vector.shape_cast %26 : vector<16xf32> to vector<16x1xf32>
    %28 = vector.broadcast %27 : vector<16x1xf32> to vector<16x16xf32>
    %29 = arith.cmpf oeq, %25, %28 : vector<16x16xf32>
    %cst_14 = arith.constant 1.600000e+01 : f32
    %30 = vector.broadcast %cst_14 : f32 to vector<16x16xf32>
    %31 = arith.select %29, %22, %30 : vector<16x16xi1>, vector<16x16xf32>
    %cst_15 = arith.constant dense<0x7F800000> : vector<16xf32>
    %32 = vector.multi_reduction <minimumf>, %31, %cst_15 [1] : vector<16x16xf32> to vector<16xf32>
    %33 = vector.shape_cast %32 : vector<16xf32> to vector<16x1xf32>
    %34 = arith.fptosi %33 : vector<16x1xf32> to vector<16x1xi32>
    %c0_i32_16 = arith.constant 0 : i32
    %35 = vector.broadcast %c0_i32_16 : i32 to vector<16x4xi32>
    %36 = arith.cmpi eq, %23, %35 : vector<16x4xi32>
    %37 = vector.shape_cast %34 : vector<16x1xi32> to vector<16x1xi32>
    %38 = vector.broadcast %37 : vector<16x1xi32> to vector<16x4xi32>
    %39 = arith.select %36, %38, %24 : vector<16x4xi1>, vector<16x4xi32>
    %40 = vector.broadcast %33 : vector<16x1xf32> to vector<16x16xf32>
    %41 = arith.cmpf oeq, %22, %40 : vector<16x16xf32>
    %cst_17 = arith.constant 0xFF800000 : f32
    %42 = vector.broadcast %cst_17 : f32 to vector<16x16xf32>
    %43 = arith.select %41, %42, %25 : vector<16x16xi1>, vector<16x16xf32>
    %c0_18 = arith.constant 0 : index
    %c0_19 = arith.constant 0 : index
    %44 = vector.load %arg5[%c0_18, %c0_19] : memref<16x16xf32, #tpu.memory_space<vmem>>, vector<16x16xf32>
    tpu.vector_store %arg5[%c0_18, %c0_19], %43 {strides = array<i32>} : memref<16x16xf32, #tpu.memory_space<vmem>>, vector<16x16xf32>,
    %c0_20 = arith.constant 0 : index
    %c0_21 = arith.constant 0 : index
    %45 = vector.load %arg5[%c0_20, %c0_21] : memref<16x16xf32, #tpu.memory_space<vmem>>, vector<16x16xf32>
    %cst_22 = arith.constant dense<0xFF800000> : vector<16xf32>
    %46 = vector.multi_reduction <maximumf>, %45, %cst_22 [1] : vector<16x16xf32> to vector<16xf32>
    %47 = vector.shape_cast %46 : vector<16xf32> to vector<16x1xf32>
    %48 = vector.broadcast %47 : vector<16x1xf32> to vector<16x16xf32>
    %49 = arith.cmpf oeq, %45, %48 : vector<16x16xf32>
    %cst_23 = arith.constant 1.600000e+01 : f32
    %50 = vector.broadcast %cst_23 : f32 to vector<16x16xf32>
    %51 = arith.select %49, %22, %50 : vector<16x16xi1>, vector<16x16xf32>
    %cst_24 = arith.constant dense<0x7F800000> : vector<16xf32>
    %52 = vector.multi_reduction <minimumf>, %51, %cst_24 [1] : vector<16x16xf32> to vector<16xf32>
    %53 = vector.shape_cast %52 : vector<16xf32> to vector<16x1xf32>
    %54 = arith.fptosi %53 : vector<16x1xf32> to vector<16x1xi32>
    %c1_i32 = arith.constant 1 : i32
    %55 = vector.broadcast %c1_i32 : i32 to vector<16x4xi32>
    %56 = arith.cmpi eq, %23, %55 : vector<16x4xi32>
    %57 = vector.shape_cast %54 : vector<16x1xi32> to vector<16x1xi32>
    %58 = vector.broadcast %57 : vector<16x1xi32> to vector<16x4xi32>
    %59 = arith.select %56, %58, %39 : vector<16x4xi1>, vector<16x4xi32>
    %60 = vector.broadcast %53 : vector<16x1xf32> to vector<16x16xf32>
    %61 = arith.cmpf oeq, %22, %60 : vector<16x16xf32>
    %cst_25 = arith.constant 0xFF800000 : f32
    %62 = vector.broadcast %cst_25 : f32 to vector<16x16xf32>
    %63 = arith.select %61, %62, %45 : vector<16x16xi1>, vector<16x16xf32>
    %c0_26 = arith.constant 0 : index
    %c0_27 = arith.constant 0 : index
    %64 = vector.load %arg5[%c0_26, %c0_27] : memref<16x16xf32, #tpu.memory_space<vmem>>, vector<16x16xf32>
    tpu.vector_store %arg5[%c0_26, %c0_27], %63 {strides = array<i32>} : memref<16x16xf32, #tpu.memory_space<vmem>>, vector<16x16xf32>,
    %c0_28 = arith.constant 0 : index
    %c0_29 = arith.constant 0 : index
    %65 = vector.load %arg5[%c0_28, %c0_29] : memref<16x16xf32, #tpu.memory_space<vmem>>, vector<16x16xf32>
    %cst_30 = arith.constant dense<0xFF800000> : vector<16xf32>
    %66 = vector.multi_reduction <maximumf>, %65, %cst_30 [1] : vector<16x16xf32> to vector<16xf32>
    %67 = vector.shape_cast %66 : vector<16xf32> to vector<16x1xf32>
    %68 = vector.broadcast %67 : vector<16x1xf32> to vector<16x16xf32>
    %69 = arith.cmpf oeq, %65, %68 : vector<16x16xf32>
    %cst_31 = arith.constant 1.600000e+01 : f32
    %70 = vector.broadcast %cst_31 : f32 to vector<16x16xf32>
    %71 = arith.select %69, %22, %70 : vector<16x16xi1>, vector<16x16xf32>
    %cst_32 = arith.constant dense<0x7F800000> : vector<16xf32>
    %72 = vector.multi_reduction <minimumf>, %71, %cst_32 [1] : vector<16x16xf32> to vector<16xf32>
    %73 = vector.shape_cast %72 : vector<16xf32> to vector<16x1xf32>
    %74 = arith.fptosi %73 : vector<16x1xf32> to vector<16x1xi32>
    %c2_i32 = arith.constant 2 : i32
    %75 = vector.broadcast %c2_i32 : i32 to vector<16x4xi32>
    %76 = arith.cmpi eq, %23, %75 : vector<16x4xi32>
    %77 = vector.shape_cast %74 : vector<16x1xi32> to vector<16x1xi32>
    %78 = vector.broadcast %77 : vector<16x1xi32> to vector<16x4xi32>
    %79 = arith.select %76, %78, %59 : vector<16x4xi1>, vector<16x4xi32>
    %80 = vector.broadcast %73 : vector<16x1xf32> to vector<16x16xf32>
    %81 = arith.cmpf oeq, %22, %80 : vector<16x16xf32>
    %cst_33 = arith.constant 0xFF800000 : f32
    %82 = vector.broadcast %cst_33 : f32 to vector<16x16xf32>
    %83 = arith.select %81, %82, %65 : vector<16x16xi1>, vector<16x16xf32>
    %c0_34 = arith.constant 0 : index
    %c0_35 = arith.constant 0 : index
    %84 = vector.load %arg5[%c0_34, %c0_35] : memref<16x16xf32, #tpu.memory_space<vmem>>, vector<16x16xf32>
    tpu.vector_store %arg5[%c0_34, %c0_35], %83 {strides = array<i32>} : memref<16x16xf32, #tpu.memory_space<vmem>>, vector<16x16xf32>,
    %c0_36 = arith.constant 0 : index
    %c0_37 = arith.constant 0 : index
    %85 = vector.load %arg5[%c0_36, %c0_37] : memref<16x16xf32, #tpu.memory_space<vmem>>, vector<16x16xf32>
    %cst_38 = arith.constant dense<0xFF800000> : vector<16xf32>
    %86 = vector.multi_reduction <maximumf>, %85, %cst_38 [1] : vector<16x16xf32> to vector<16xf32>
    %87 = vector.shape_cast %86 : vector<16xf32> to vector<16x1xf32>
    %88 = vector.broadcast %87 : vector<16x1xf32> to vector<16x16xf32>
    %89 = arith.cmpf oeq, %85, %88 : vector<16x16xf32>
    %cst_39 = arith.constant 1.600000e+01 : f32
    %90 = vector.broadcast %cst_39 : f32 to vector<16x16xf32>
    %91 = arith.select %89, %22, %90 : vector<16x16xi1>, vector<16x16xf32>
    %cst_40 = arith.constant dense<0x7F800000> : vector<16xf32>
    %92 = vector.multi_reduction <minimumf>, %91, %cst_40 [1] : vector<16x16xf32> to vector<16xf32>
    %93 = vector.shape_cast %92 : vector<16xf32> to vector<16x1xf32>
    %94 = arith.fptosi %93 : vector<16x1xf32> to vector<16x1xi32>
    %c3_i32 = arith.constant 3 : i32
    %95 = vector.broadcast %c3_i32 : i32 to vector<16x4xi32>
    %96 = arith.cmpi eq, %23, %95 : vector<16x4xi32>
    %97 = vector.shape_cast %94 : vector<16x1xi32> to vector<16x1xi32>
    %98 = vector.broadcast %97 : vector<16x1xi32> to vector<16x4xi32>
    %99 = arith.select %96, %98, %79 : vector<16x4xi1>, vector<16x4xi32>
    %c0_41 = arith.constant 0 : index
    %c0_42 = arith.constant 0 : index
    %c0_43 = arith.constant 0 : index
    %100 = vector.load %arg4[%c0_41, %c0_42, %c0_43] : memref<1x16x4xi32, #tpu.memory_space<vmem>>, vector<1x16x4xi32>
    %101 = vector.shape_cast %100 : vector<1x16x4xi32> to vector<16x4xi32>
    %102 = vector.shape_cast %99 : vector<16x4xi32> to vector<1x16x4xi32>
    tpu.vector_store %arg4[%c0_41, %c0_42, %c0_43], %102 {strides = array<i32>} : memref<1x16x4xi32, #tpu.memory_space<vmem>>, vector<1x16x4xi32>,
    return
  }
  func.func @transform_0(%arg0: i32, %arg1: i32) -> (i32, i32, i32) {
    %c0_i32 = arith.constant 0 : i32
    %c0_i32_0 = arith.constant 0 : i32
    %c0_i32_1 = arith.constant 0 : i32
    return %arg0, %c0_i32, %c0_i32_0 : i32, i32, i32
  }
  func.func @transform_1(%arg0: i32, %arg1: i32) -> (i32, i32, i32) {
    %c0_i32 = arith.constant 0 : i32
    %c0_i32_0 = arith.constant 0 : i32
    %c0_i32_1 = arith.constant 0 : i32
    return %arg0, %c0_i32, %c0_i32_0 : i32, i32, i32
  }
  func.func @transform_2(%arg0: i32, %arg1: i32) -> (i32, i32, i32) {
    %c0_i32 = arith.constant 0 : i32
    %c0_i32_0 = arith.constant 0 : i32
    return %arg0, %arg1, %c0_i32 : i32, i32, i32
  }
}

module attributes {stable_mosaic.version = 11 : i64} {
  func.func @_edgeconv_kernel(%arg0: i32, %arg1: i32, %arg2: memref<1x4x16x3xbf16, #tpu.memory_space<vmem>>, %arg3: memref<1x16x3xbf16, #tpu.memory_space<vmem>>, %arg4: memref<3x128xbf16, #tpu.memory_space<vmem>>, %arg5: memref<3x128xbf16, #tpu.memory_space<vmem>>, %arg6: memref<1x128xf32, #tpu.memory_space<vmem>>, %arg7: memref<1x16x128xbf16, #tpu.memory_space<vmem>>) attributes {dimension_semantics = [#tpu.dimension_semantics<parallel>, #tpu.dimension_semantics<parallel>], iteration_bounds = array<i64: 2, 1>, scalar_prefetch = 0 : i64, scratch_operands = 0 : i64, tpu.core_type = #tpu.core_type<tc>, window_params = [{transform_indices = @transform_0, window_bounds = array<i64: 1, 4, 16, 3>}, {transform_indices = @transform_1, window_bounds = array<i64: 1, 16, 3>}, {pipeline_mode = #tpu.pipeline_mode<synchronous>, transform_indices = @transform_2, window_bounds = array<i64: 3, 128>}, {pipeline_mode = #tpu.pipeline_mode<synchronous>, transform_indices = @transform_3, window_bounds = array<i64: 3, 128>}, {pipeline_mode = #tpu.pipeline_mode<synchronous>, transform_indices = @transform_4, window_bounds = array<i64: 1, 128>}, {transform_indices = @transform_5, window_bounds = array<i64: 1, 16, 128>}]} {
    %c0 = arith.constant 0 : index
    %c0_0 = arith.constant 0 : index
    %c0_1 = arith.constant 0 : index
    %c0_2 = arith.constant 0 : index
    %0 = vector.load %arg2[%c0, %c0_0, %c0_1, %c0_2] : memref<1x4x16x3xbf16, #tpu.memory_space<vmem>>, vector<1x4x16x3xbf16>
    %1 = vector.shape_cast %0 : vector<1x4x16x3xbf16> to vector<4x16x3xbf16>
    %2 = vector.shape_cast %1 : vector<4x16x3xbf16> to vector<64x3xbf16>
    %c0_3 = arith.constant 0 : index
    %c0_4 = arith.constant 0 : index
    %3 = vector.load %arg4[%c0_3, %c0_4] : memref<3x128xbf16, #tpu.memory_space<vmem>>, vector<3x128xbf16>
    %cst = arith.constant dense<0.000000e+00> : vector<64x128xf32>
    %4 = tpu.matmul %2, %3, %cst {dimension_numbers = #tpu.dot_dimension_numbers<[1], [0], [0], [1], [0, 0, 1, 1], [], []>} : vector<64x3xbf16>, vector<3x128xbf16>, vector<64x128xf32> -> vector<64x128xf32>
    %5 = vector.extract_strided_slice %4 {offsets = [0, 0], sizes = [16, 128], strides = [1, 1]} : vector<64x128xf32> to vector<16x128xf32>
    %6 = vector.extract_strided_slice %4 {offsets = [16, 0], sizes = [16, 128], strides = [1, 1]} : vector<64x128xf32> to vector<16x128xf32>
    %7 = arith.maximumf %5, %6 : vector<16x128xf32>
    %8 = vector.extract_strided_slice %4 {offsets = [32, 0], sizes = [16, 128], strides = [1, 1]} : vector<64x128xf32> to vector<16x128xf32>
    %9 = arith.maximumf %7, %8 : vector<16x128xf32>
    %10 = vector.extract_strided_slice %4 {offsets = [48, 0], sizes = [16, 128], strides = [1, 1]} : vector<64x128xf32> to vector<16x128xf32>
    %11 = arith.maximumf %9, %10 : vector<16x128xf32>
    %c0_5 = arith.constant 0 : index
    %c0_6 = arith.constant 0 : index
    %c0_7 = arith.constant 0 : index
    %12 = vector.load %arg3[%c0_5, %c0_6, %c0_7] : memref<1x16x3xbf16, #tpu.memory_space<vmem>>, vector<1x16x3xbf16>
    %13 = vector.shape_cast %12 : vector<1x16x3xbf16> to vector<16x3xbf16>
    %c0_8 = arith.constant 0 : index
    %c0_9 = arith.constant 0 : index
    %14 = vector.load %arg5[%c0_8, %c0_9] : memref<3x128xbf16, #tpu.memory_space<vmem>>, vector<3x128xbf16>
    %cst_10 = arith.constant dense<0.000000e+00> : vector<16x128xf32>
    %15 = tpu.matmul %13, %14, %cst_10 {dimension_numbers = #tpu.dot_dimension_numbers<[1], [0], [0], [1], [0, 0, 1, 1], [], []>} : vector<16x3xbf16>, vector<3x128xbf16>, vector<16x128xf32> -> vector<16x128xf32>
    %c0_11 = arith.constant 0 : index
    %c0_12 = arith.constant 0 : index
    %16 = vector.load %arg6[%c0_11, %c0_12] : memref<1x128xf32, #tpu.memory_space<vmem>>, vector<1x128xf32>
    %17 = vector.broadcast %16 : vector<1x128xf32> to vector<16x128xf32>
    %18 = arith.addf %15, %17 : vector<16x128xf32>
    %19 = arith.addf %11, %18 : vector<16x128xf32>
    %cst_13 = arith.constant 2.000000e-01 : f32
    %20 = vector.broadcast %cst_13 : f32 to vector<16x128xf32>
    %21 = arith.mulf %20, %19 : vector<16x128xf32>
    %22 = arith.maximumf %19, %21 : vector<16x128xf32>
    %23 = arith.truncf %22 : vector<16x128xf32> to vector<16x128xbf16>
    %c0_14 = arith.constant 0 : index
    %c0_15 = arith.constant 0 : index
    %c0_16 = arith.constant 0 : index
    %24 = vector.load %arg7[%c0_14, %c0_15, %c0_16] : memref<1x16x128xbf16, #tpu.memory_space<vmem>>, vector<1x16x128xbf16>
    %25 = vector.shape_cast %24 : vector<1x16x128xbf16> to vector<16x128xbf16>
    %26 = vector.shape_cast %23 : vector<16x128xbf16> to vector<1x16x128xbf16>
    tpu.vector_store %arg7[%c0_14, %c0_15, %c0_16], %26 {strides = array<i32>} : memref<1x16x128xbf16, #tpu.memory_space<vmem>>, vector<1x16x128xbf16>,
    return
  }
  func.func @transform_0(%arg0: i32, %arg1: i32) -> (i32, i32, i32, i32) {
    %c0_i32 = arith.constant 0 : i32
    %c0_i32_0 = arith.constant 0 : i32
    %c0_i32_1 = arith.constant 0 : i32
    return %arg0, %c0_i32, %arg1, %c0_i32_0 : i32, i32, i32, i32
  }
  func.func @transform_1(%arg0: i32, %arg1: i32) -> (i32, i32, i32) {
    %c0_i32 = arith.constant 0 : i32
    %c0_i32_0 = arith.constant 0 : i32
    return %arg0, %arg1, %c0_i32 : i32, i32, i32
  }
  func.func @transform_2(%arg0: i32, %arg1: i32) -> (i32, i32) {
    %c0_i32 = arith.constant 0 : i32
    %c0_i32_0 = arith.constant 0 : i32
    %c0_i32_1 = arith.constant 0 : i32
    return %c0_i32, %c0_i32_0 : i32, i32
  }
  func.func @transform_3(%arg0: i32, %arg1: i32) -> (i32, i32) {
    %c0_i32 = arith.constant 0 : i32
    %c0_i32_0 = arith.constant 0 : i32
    %c0_i32_1 = arith.constant 0 : i32
    return %c0_i32, %c0_i32_0 : i32, i32
  }
  func.func @transform_4(%arg0: i32, %arg1: i32) -> (i32, i32) {
    %c0_i32 = arith.constant 0 : i32
    %c0_i32_0 = arith.constant 0 : i32
    %c0_i32_1 = arith.constant 0 : i32
    return %c0_i32, %c0_i32_0 : i32, i32
  }
  func.func @transform_5(%arg0: i32, %arg1: i32) -> (i32, i32, i32) {
    %c0_i32 = arith.constant 0 : i32
    %c0_i32_0 = arith.constant 0 : i32
    return %arg0, %arg1, %c0_i32 : i32, i32, i32
  }
}

module attributes {stable_mosaic.version = 11 : i64} {
  func.func @_knn_kernel(%arg0: i32, %arg1: i32, %arg2: memref<1x16x128xbf16, #tpu.memory_space<vmem>>, %arg3: memref<1x1x16xf32, #tpu.memory_space<vmem>>, %arg4: memref<1x16x4xi32, #tpu.memory_space<vmem>>, %arg5: memref<16x16xf32, #tpu.memory_space<vmem>>) attributes {dimension_semantics = [#tpu.dimension_semantics<parallel>, #tpu.dimension_semantics<parallel>], iteration_bounds = array<i64: 2, 1>, scalar_prefetch = 0 : i64, scratch_operands = 1 : i64, tpu.core_type = #tpu.core_type<tc>, window_params = [{transform_indices = @transform_0, window_bounds = array<i64: 1, 16, 128>}, {transform_indices = @transform_1, window_bounds = array<i64: 1, 1, 16>}, {transform_indices = @transform_2, window_bounds = array<i64: 1, 16, 4>}]} {
    %c16_i32 = arith.constant 16 : i32
    %0 = arith.muli %arg1, %c16_i32 : i32
    %1 = tpu.assume_multiple %0, 16 : i32
    %c0 = arith.constant 0 : index
    %2 = arith.index_cast %1 : i32 to index
    %c0_0 = arith.constant 0 : index
    %3 = vector.load %arg2[%c0, %2, %c0_0] : memref<1x16x128xbf16, #tpu.memory_space<vmem>>, vector<1x16x128xbf16>
    %4 = vector.shape_cast %3 : vector<1x16x128xbf16> to vector<16x128xbf16>
    %c0_1 = arith.constant 0 : index
    %c0_2 = arith.constant 0 : index
    %c0_3 = arith.constant 0 : index
    %5 = vector.load %arg2[%c0_1, %c0_2, %c0_3] : memref<1x16x128xbf16, #tpu.memory_space<vmem>>, vector<1x16x128xbf16>
    %6 = vector.shape_cast %5 : vector<1x16x128xbf16> to vector<16x128xbf16>
    %cst = arith.constant dense<0.000000e+00> : vector<16x16xf32>
    %7 = tpu.matmul %4, %6, %cst {dimension_numbers = #tpu.dot_dimension_numbers<[1], [1], [0], [0], [0, 0, 1, 0], [], []>} : vector<16x128xbf16>, vector<16x128xbf16>, vector<16x16xf32> -> vector<16x16xf32>
    %8 = arith.extf %4 : vector<16x128xbf16> to vector<16x128xf32>
    %9 = arith.mulf %8, %8 : vector<16x128xf32>
    %cst_4 = arith.constant dense<0.000000e+00> : vector<16xf32>
    %10 = vector.multi_reduction <add>, %9, %cst_4 [1] : vector<16x128xf32> to vector<16xf32>
    %11 = vector.shape_cast %10 : vector<16xf32> to vector<16x1xf32>
    %cst_5 = arith.constant 2.000000e+00 : f32
    %12 = vector.broadcast %cst_5 : f32 to vector<16x16xf32>
    %13 = arith.mulf %12, %7 : vector<16x16xf32>
    %14 = vector.broadcast %11 : vector<16x1xf32> to vector<16x16xf32>
    %15 = arith.subf %13, %14 : vector<16x16xf32>
    %c0_6 = arith.constant 0 : index
    %c0_7 = arith.constant 0 : index
    %c0_8 = arith.constant 0 : index
    %16 = vector.load %arg3[%c0_6, %c0_7, %c0_8] : memref<1x1x16xf32, #tpu.memory_space<vmem>>, vector<1x1x16xf32>
    %17 = vector.shape_cast %16 : vector<1x1x16xf32> to vector<1x16xf32>
    %18 = vector.broadcast %17 : vector<1x16xf32> to vector<16x16xf32>
    %19 = arith.subf %15, %18 : vector<16x16xf32>
    %c0_9 = arith.constant 0 : index
    %c0_10 = arith.constant 0 : index
    %20 = vector.load %arg5[%c0_9, %c0_10] : memref<16x16xf32, #tpu.memory_space<vmem>>, vector<16x16xf32>
    tpu.vector_store %arg5[%c0_9, %c0_10], %19 {strides = array<i32>} : memref<16x16xf32, #tpu.memory_space<vmem>>, vector<16x16xf32>,
    %21 = tpu.iota {dimensions = array<i32: 1>} : vector<16x16xi32>
    %22 = arith.sitofp %21 : vector<16x16xi32> to vector<16x16xf32>
    %23 = tpu.iota {dimensions = array<i32: 1>} : vector<16x4xi32>
    %c0_i32 = arith.constant 0 : i32
    %24 = vector.broadcast %c0_i32 : i32 to vector<16x4xi32>
    %c0_11 = arith.constant 0 : index
    %c0_12 = arith.constant 0 : index
    %25 = vector.load %arg5[%c0_11, %c0_12] : memref<16x16xf32, #tpu.memory_space<vmem>>, vector<16x16xf32>
    %cst_13 = arith.constant dense<0xFF800000> : vector<16xf32>
    %26 = vector.multi_reduction <maximumf>, %25, %cst_13 [1] : vector<16x16xf32> to vector<16xf32>
    %27 = vector.shape_cast %26 : vector<16xf32> to vector<16x1xf32>
    %28 = vector.broadcast %27 : vector<16x1xf32> to vector<16x16xf32>
    %29 = arith.cmpf oeq, %25, %28 : vector<16x16xf32>
    %cst_14 = arith.constant 1.600000e+01 : f32
    %30 = vector.broadcast %cst_14 : f32 to vector<16x16xf32>
    %31 = arith.select %29, %22, %30 : vector<16x16xi1>, vector<16x16xf32>
    %cst_15 = arith.constant dense<0x7F800000> : vector<16xf32>
    %32 = vector.multi_reduction <minimumf>, %31, %cst_15 [1] : vector<16x16xf32> to vector<16xf32>
    %33 = vector.shape_cast %32 : vector<16xf32> to vector<16x1xf32>
    %34 = arith.fptosi %33 : vector<16x1xf32> to vector<16x1xi32>
    %c0_i32_16 = arith.constant 0 : i32
    %35 = vector.broadcast %c0_i32_16 : i32 to vector<16x4xi32>
    %36 = arith.cmpi eq, %23, %35 : vector<16x4xi32>
    %37 = vector.shape_cast %34 : vector<16x1xi32> to vector<16x1xi32>
    %38 = vector.broadcast %37 : vector<16x1xi32> to vector<16x4xi32>
    %39 = arith.select %36, %38, %24 : vector<16x4xi1>, vector<16x4xi32>
    %40 = vector.broadcast %33 : vector<16x1xf32> to vector<16x16xf32>
    %41 = arith.cmpf oeq, %22, %40 : vector<16x16xf32>
    %cst_17 = arith.constant 0xFF800000 : f32
    %42 = vector.broadcast %cst_17 : f32 to vector<16x16xf32>
    %43 = arith.select %41, %42, %25 : vector<16x16xi1>, vector<16x16xf32>
    %c0_18 = arith.constant 0 : index
    %c0_19 = arith.constant 0 : index
    %44 = vector.load %arg5[%c0_18, %c0_19] : memref<16x16xf32, #tpu.memory_space<vmem>>, vector<16x16xf32>
    tpu.vector_store %arg5[%c0_18, %c0_19], %43 {strides = array<i32>} : memref<16x16xf32, #tpu.memory_space<vmem>>, vector<16x16xf32>,
    %c0_20 = arith.constant 0 : index
    %c0_21 = arith.constant 0 : index
    %45 = vector.load %arg5[%c0_20, %c0_21] : memref<16x16xf32, #tpu.memory_space<vmem>>, vector<16x16xf32>
    %cst_22 = arith.constant dense<0xFF800000> : vector<16xf32>
    %46 = vector.multi_reduction <maximumf>, %45, %cst_22 [1] : vector<16x16xf32> to vector<16xf32>
    %47 = vector.shape_cast %46 : vector<16xf32> to vector<16x1xf32>
    %48 = vector.broadcast %47 : vector<16x1xf32> to vector<16x16xf32>
    %49 = arith.cmpf oeq, %45, %48 : vector<16x16xf32>
    %cst_23 = arith.constant 1.600000e+01 : f32
    %50 = vector.broadcast %cst_23 : f32 to vector<16x16xf32>
    %51 = arith.select %49, %22, %50 : vector<16x16xi1>, vector<16x16xf32>
    %cst_24 = arith.constant dense<0x7F800000> : vector<16xf32>
    %52 = vector.multi_reduction <minimumf>, %51, %cst_24 [1] : vector<16x16xf32> to vector<16xf32>
    %53 = vector.shape_cast %52 : vector<16xf32> to vector<16x1xf32>
    %54 = arith.fptosi %53 : vector<16x1xf32> to vector<16x1xi32>
    %c1_i32 = arith.constant 1 : i32
    %55 = vector.broadcast %c1_i32 : i32 to vector<16x4xi32>
    %56 = arith.cmpi eq, %23, %55 : vector<16x4xi32>
    %57 = vector.shape_cast %54 : vector<16x1xi32> to vector<16x1xi32>
    %58 = vector.broadcast %57 : vector<16x1xi32> to vector<16x4xi32>
    %59 = arith.select %56, %58, %39 : vector<16x4xi1>, vector<16x4xi32>
    %60 = vector.broadcast %53 : vector<16x1xf32> to vector<16x16xf32>
    %61 = arith.cmpf oeq, %22, %60 : vector<16x16xf32>
    %cst_25 = arith.constant 0xFF800000 : f32
    %62 = vector.broadcast %cst_25 : f32 to vector<16x16xf32>
    %63 = arith.select %61, %62, %45 : vector<16x16xi1>, vector<16x16xf32>
    %c0_26 = arith.constant 0 : index
    %c0_27 = arith.constant 0 : index
    %64 = vector.load %arg5[%c0_26, %c0_27] : memref<16x16xf32, #tpu.memory_space<vmem>>, vector<16x16xf32>
    tpu.vector_store %arg5[%c0_26, %c0_27], %63 {strides = array<i32>} : memref<16x16xf32, #tpu.memory_space<vmem>>, vector<16x16xf32>,
    %c0_28 = arith.constant 0 : index
    %c0_29 = arith.constant 0 : index
    %65 = vector.load %arg5[%c0_28, %c0_29] : memref<16x16xf32, #tpu.memory_space<vmem>>, vector<16x16xf32>
    %cst_30 = arith.constant dense<0xFF800000> : vector<16xf32>
    %66 = vector.multi_reduction <maximumf>, %65, %cst_30 [1] : vector<16x16xf32> to vector<16xf32>
    %67 = vector.shape_cast %66 : vector<16xf32> to vector<16x1xf32>
    %68 = vector.broadcast %67 : vector<16x1xf32> to vector<16x16xf32>
    %69 = arith.cmpf oeq, %65, %68 : vector<16x16xf32>
    %cst_31 = arith.constant 1.600000e+01 : f32
    %70 = vector.broadcast %cst_31 : f32 to vector<16x16xf32>
    %71 = arith.select %69, %22, %70 : vector<16x16xi1>, vector<16x16xf32>
    %cst_32 = arith.constant dense<0x7F800000> : vector<16xf32>
    %72 = vector.multi_reduction <minimumf>, %71, %cst_32 [1] : vector<16x16xf32> to vector<16xf32>
    %73 = vector.shape_cast %72 : vector<16xf32> to vector<16x1xf32>
    %74 = arith.fptosi %73 : vector<16x1xf32> to vector<16x1xi32>
    %c2_i32 = arith.constant 2 : i32
    %75 = vector.broadcast %c2_i32 : i32 to vector<16x4xi32>
    %76 = arith.cmpi eq, %23, %75 : vector<16x4xi32>
    %77 = vector.shape_cast %74 : vector<16x1xi32> to vector<16x1xi32>
    %78 = vector.broadcast %77 : vector<16x1xi32> to vector<16x4xi32>
    %79 = arith.select %76, %78, %59 : vector<16x4xi1>, vector<16x4xi32>
    %80 = vector.broadcast %73 : vector<16x1xf32> to vector<16x16xf32>
    %81 = arith.cmpf oeq, %22, %80 : vector<16x16xf32>
    %cst_33 = arith.constant 0xFF800000 : f32
    %82 = vector.broadcast %cst_33 : f32 to vector<16x16xf32>
    %83 = arith.select %81, %82, %65 : vector<16x16xi1>, vector<16x16xf32>
    %c0_34 = arith.constant 0 : index
    %c0_35 = arith.constant 0 : index
    %84 = vector.load %arg5[%c0_34, %c0_35] : memref<16x16xf32, #tpu.memory_space<vmem>>, vector<16x16xf32>
    tpu.vector_store %arg5[%c0_34, %c0_35], %83 {strides = array<i32>} : memref<16x16xf32, #tpu.memory_space<vmem>>, vector<16x16xf32>,
    %c0_36 = arith.constant 0 : index
    %c0_37 = arith.constant 0 : index
    %85 = vector.load %arg5[%c0_36, %c0_37] : memref<16x16xf32, #tpu.memory_space<vmem>>, vector<16x16xf32>
    %cst_38 = arith.constant dense<0xFF800000> : vector<16xf32>
    %86 = vector.multi_reduction <maximumf>, %85, %cst_38 [1] : vector<16x16xf32> to vector<16xf32>
    %87 = vector.shape_cast %86 : vector<16xf32> to vector<16x1xf32>
    %88 = vector.broadcast %87 : vector<16x1xf32> to vector<16x16xf32>
    %89 = arith.cmpf oeq, %85, %88 : vector<16x16xf32>
    %cst_39 = arith.constant 1.600000e+01 : f32
    %90 = vector.broadcast %cst_39 : f32 to vector<16x16xf32>
    %91 = arith.select %89, %22, %90 : vector<16x16xi1>, vector<16x16xf32>
    %cst_40 = arith.constant dense<0x7F800000> : vector<16xf32>
    %92 = vector.multi_reduction <minimumf>, %91, %cst_40 [1] : vector<16x16xf32> to vector<16xf32>
    %93 = vector.shape_cast %92 : vector<16xf32> to vector<16x1xf32>
    %94 = arith.fptosi %93 : vector<16x1xf32> to vector<16x1xi32>
    %c3_i32 = arith.constant 3 : i32
    %95 = vector.broadcast %c3_i32 : i32 to vector<16x4xi32>
    %96 = arith.cmpi eq, %23, %95 : vector<16x4xi32>
    %97 = vector.shape_cast %94 : vector<16x1xi32> to vector<16x1xi32>
    %98 = vector.broadcast %97 : vector<16x1xi32> to vector<16x4xi32>
    %99 = arith.select %96, %98, %79 : vector<16x4xi1>, vector<16x4xi32>
    %c0_41 = arith.constant 0 : index
    %c0_42 = arith.constant 0 : index
    %c0_43 = arith.constant 0 : index
    %100 = vector.load %arg4[%c0_41, %c0_42, %c0_43] : memref<1x16x4xi32, #tpu.memory_space<vmem>>, vector<1x16x4xi32>
    %101 = vector.shape_cast %100 : vector<1x16x4xi32> to vector<16x4xi32>
    %102 = vector.shape_cast %99 : vector<16x4xi32> to vector<1x16x4xi32>
    tpu.vector_store %arg4[%c0_41, %c0_42, %c0_43], %102 {strides = array<i32>} : memref<1x16x4xi32, #tpu.memory_space<vmem>>, vector<1x16x4xi32>,
    return
  }
  func.func @transform_0(%arg0: i32, %arg1: i32) -> (i32, i32, i32) {
    %c0_i32 = arith.constant 0 : i32
    %c0_i32_0 = arith.constant 0 : i32
    %c0_i32_1 = arith.constant 0 : i32
    return %arg0, %c0_i32, %c0_i32_0 : i32, i32, i32
  }
  func.func @transform_1(%arg0: i32, %arg1: i32) -> (i32, i32, i32) {
    %c0_i32 = arith.constant 0 : i32
    %c0_i32_0 = arith.constant 0 : i32
    %c0_i32_1 = arith.constant 0 : i32
    return %arg0, %c0_i32, %c0_i32_0 : i32, i32, i32
  }
  func.func @transform_2(%arg0: i32, %arg1: i32) -> (i32, i32, i32) {
    %c0_i32 = arith.constant 0 : i32
    %c0_i32_0 = arith.constant 0 : i32
    return %arg0, %arg1, %c0_i32 : i32, i32, i32
  }
}

module attributes {stable_mosaic.version = 11 : i64} {
  func.func @_edgeconv_kernel(%arg0: i32, %arg1: i32, %arg2: memref<1x4x16x128xbf16, #tpu.memory_space<vmem>>, %arg3: memref<1x16x128xbf16, #tpu.memory_space<vmem>>, %arg4: memref<128x128xbf16, #tpu.memory_space<vmem>>, %arg5: memref<128x128xbf16, #tpu.memory_space<vmem>>, %arg6: memref<1x128xf32, #tpu.memory_space<vmem>>, %arg7: memref<1x16x128xbf16, #tpu.memory_space<vmem>>) attributes {dimension_semantics = [#tpu.dimension_semantics<parallel>, #tpu.dimension_semantics<parallel>], iteration_bounds = array<i64: 2, 1>, scalar_prefetch = 0 : i64, scratch_operands = 0 : i64, tpu.core_type = #tpu.core_type<tc>, window_params = [{transform_indices = @transform_0, window_bounds = array<i64: 1, 4, 16, 128>}, {transform_indices = @transform_1, window_bounds = array<i64: 1, 16, 128>}, {pipeline_mode = #tpu.pipeline_mode<synchronous>, transform_indices = @transform_2, window_bounds = array<i64: 128, 128>}, {pipeline_mode = #tpu.pipeline_mode<synchronous>, transform_indices = @transform_3, window_bounds = array<i64: 128, 128>}, {pipeline_mode = #tpu.pipeline_mode<synchronous>, transform_indices = @transform_4, window_bounds = array<i64: 1, 128>}, {transform_indices = @transform_5, window_bounds = array<i64: 1, 16, 128>}]} {
    %c0 = arith.constant 0 : index
    %c0_0 = arith.constant 0 : index
    %c0_1 = arith.constant 0 : index
    %c0_2 = arith.constant 0 : index
    %0 = vector.load %arg2[%c0, %c0_0, %c0_1, %c0_2] : memref<1x4x16x128xbf16, #tpu.memory_space<vmem>>, vector<1x4x16x128xbf16>
    %1 = vector.shape_cast %0 : vector<1x4x16x128xbf16> to vector<4x16x128xbf16>
    %2 = vector.shape_cast %1 : vector<4x16x128xbf16> to vector<64x128xbf16>
    %c0_3 = arith.constant 0 : index
    %c0_4 = arith.constant 0 : index
    %3 = vector.load %arg4[%c0_3, %c0_4] : memref<128x128xbf16, #tpu.memory_space<vmem>>, vector<128x128xbf16>
    %cst = arith.constant dense<0.000000e+00> : vector<64x128xf32>
    %4 = tpu.matmul %2, %3, %cst {dimension_numbers = #tpu.dot_dimension_numbers<[1], [0], [0], [1], [0, 0, 1, 1], [], []>} : vector<64x128xbf16>, vector<128x128xbf16>, vector<64x128xf32> -> vector<64x128xf32>
    %5 = vector.extract_strided_slice %4 {offsets = [0, 0], sizes = [16, 128], strides = [1, 1]} : vector<64x128xf32> to vector<16x128xf32>
    %6 = vector.extract_strided_slice %4 {offsets = [16, 0], sizes = [16, 128], strides = [1, 1]} : vector<64x128xf32> to vector<16x128xf32>
    %7 = arith.maximumf %5, %6 : vector<16x128xf32>
    %8 = vector.extract_strided_slice %4 {offsets = [32, 0], sizes = [16, 128], strides = [1, 1]} : vector<64x128xf32> to vector<16x128xf32>
    %9 = arith.maximumf %7, %8 : vector<16x128xf32>
    %10 = vector.extract_strided_slice %4 {offsets = [48, 0], sizes = [16, 128], strides = [1, 1]} : vector<64x128xf32> to vector<16x128xf32>
    %11 = arith.maximumf %9, %10 : vector<16x128xf32>
    %c0_5 = arith.constant 0 : index
    %c0_6 = arith.constant 0 : index
    %c0_7 = arith.constant 0 : index
    %12 = vector.load %arg3[%c0_5, %c0_6, %c0_7] : memref<1x16x128xbf16, #tpu.memory_space<vmem>>, vector<1x16x128xbf16>
    %13 = vector.shape_cast %12 : vector<1x16x128xbf16> to vector<16x128xbf16>
    %c0_8 = arith.constant 0 : index
    %c0_9 = arith.constant 0 : index
    %14 = vector.load %arg5[%c0_8, %c0_9] : memref<128x128xbf16, #tpu.memory_space<vmem>>, vector<128x128xbf16>
    %cst_10 = arith.constant dense<0.000000e+00> : vector<16x128xf32>
    %15 = tpu.matmul %13, %14, %cst_10 {dimension_numbers = #tpu.dot_dimension_numbers<[1], [0], [0], [1], [0, 0, 1, 1], [], []>} : vector<16x128xbf16>, vector<128x128xbf16>, vector<16x128xf32> -> vector<16x128xf32>
    %c0_11 = arith.constant 0 : index
    %c0_12 = arith.constant 0 : index
    %16 = vector.load %arg6[%c0_11, %c0_12] : memref<1x128xf32, #tpu.memory_space<vmem>>, vector<1x128xf32>
    %17 = vector.broadcast %16 : vector<1x128xf32> to vector<16x128xf32>
    %18 = arith.addf %15, %17 : vector<16x128xf32>
    %19 = arith.addf %11, %18 : vector<16x128xf32>
    %cst_13 = arith.constant 2.000000e-01 : f32
    %20 = vector.broadcast %cst_13 : f32 to vector<16x128xf32>
    %21 = arith.mulf %20, %19 : vector<16x128xf32>
    %22 = arith.maximumf %19, %21 : vector<16x128xf32>
    %23 = arith.truncf %22 : vector<16x128xf32> to vector<16x128xbf16>
    %c0_14 = arith.constant 0 : index
    %c0_15 = arith.constant 0 : index
    %c0_16 = arith.constant 0 : index
    %24 = vector.load %arg7[%c0_14, %c0_15, %c0_16] : memref<1x16x128xbf16, #tpu.memory_space<vmem>>, vector<1x16x128xbf16>
    %25 = vector.shape_cast %24 : vector<1x16x128xbf16> to vector<16x128xbf16>
    %26 = vector.shape_cast %23 : vector<16x128xbf16> to vector<1x16x128xbf16>
    tpu.vector_store %arg7[%c0_14, %c0_15, %c0_16], %26 {strides = array<i32>} : memref<1x16x128xbf16, #tpu.memory_space<vmem>>, vector<1x16x128xbf16>,
    return
  }
  func.func @transform_0(%arg0: i32, %arg1: i32) -> (i32, i32, i32, i32) {
    %c0_i32 = arith.constant 0 : i32
    %c0_i32_0 = arith.constant 0 : i32
    %c0_i32_1 = arith.constant 0 : i32
    return %arg0, %c0_i32, %arg1, %c0_i32_0 : i32, i32, i32, i32
  }
  func.func @transform_1(%arg0: i32, %arg1: i32) -> (i32, i32, i32) {
    %c0_i32 = arith.constant 0 : i32
    %c0_i32_0 = arith.constant 0 : i32
    return %arg0, %arg1, %c0_i32 : i32, i32, i32
  }
  func.func @transform_2(%arg0: i32, %arg1: i32) -> (i32, i32) {
    %c0_i32 = arith.constant 0 : i32
    %c0_i32_0 = arith.constant 0 : i32
    %c0_i32_1 = arith.constant 0 : i32
    return %c0_i32, %c0_i32_0 : i32, i32
  }
  func.func @transform_3(%arg0: i32, %arg1: i32) -> (i32, i32) {
    %c0_i32 = arith.constant 0 : i32
    %c0_i32_0 = arith.constant 0 : i32
    %c0_i32_1 = arith.constant 0 : i32
    return %c0_i32, %c0_i32_0 : i32, i32
  }
  func.func @transform_4(%arg0: i32, %arg1: i32) -> (i32, i32) {
    %c0_i32 = arith.constant 0 : i32
    %c0_i32_0 = arith.constant 0 : i32
    %c0_i32_1 = arith.constant 0 : i32
    return %c0_i32, %c0_i32_0 : i32, i32
  }
  func.func @transform_5(%arg0: i32, %arg1: i32) -> (i32, i32, i32) {
    %c0_i32 = arith.constant 0 : i32
    %c0_i32_0 = arith.constant 0 : i32
    return %arg0, %arg1, %c0_i32 : i32, i32, i32
  }
}

</mosaic_0001>

<bundles_post_ra>
// kernel: _lambda_.9
= control target key start
LH: loop header
LB: loop body
LE: loop exit
PB: predicated region body
PF: predicated region fallthrough
CT: control target
= control target key end

     0   :  { %s752_s18 = smov 0   ;;  %s754_s19 = smov 0   ;;  %s805_s0 = inlined_call_operand.vmem [shape: bf16[2,4,16,3], index: 0, kind: input, shape index: {}]   ;;  %s806_s1 = inlined_call_operand.vmem [shape: bf16[2,16,3], index: 1, kind: input, shape index: {}]   ;;  %s807_s2 = inlined_call_operand.vmem [shape: bf16[3,128], index: 2, kind: input, shape index: {}]   ;;  %s808_s3 = inlined_call_operand.vmem [shape: bf16[3,128], index: 3, kind: input, shape index: {}]   ;;  %s809_s4 = inlined_call_operand.vmem [shape: f32[1,128], index: 4, kind: input, shape index: {}]   ;;  %s810_s5 = inlined_call_operand.vmem [shape: bf16[2,16,128], index: 5, kind: output, shape index: {}]  }
   0x1   :  { %s756_s20 = smov 0  }
   0x2 LB: > { %s27_s21 = sadd.s32 1, %s713_s19  ;;  %p608_p0 = scmp.ge.s32.totalorder %s717_s20, 1  ;;  %s717_s20 = sphi %s756_s20, %s15_s20   ;;  %s713_s19 = sphi %s754_s19, %s812_s19   ;;  %s709_s18 = sphi %s752_s18, %s811_s18  }
   0x3   : > { %p29_p1 = scmp.ge.s32.totalorder %s27_s21, 2  ;;  %p225_p2 = scmp.lt.s32.totalorder %s717_s20, 3 }
   0x5   : > { %s814_s21 = smov (%p29_p1, %s27_s21), 0  ;;  %p226_p3 = pnand %p608_p0, %p225_p2 }
   0x6   : > { %v309_v0 = vld [vmem:[%s807_s2] sm:$0x3] (!%p226_p3)  ;;  %vm343_vm0 = vcmask (!%p226_p3), 1040384   ;;  %vm344_vm1 = vcmask (!%p226_p3), 1041408   ;;  %p271_p4 = scmp.lt.s32.totalorder (!%p226_p3), %s709_s18, 1  ;;  %v719_v1 = vmov (!%p226_p3), 65535  }
   0x7   : > { %229 = sbr.rel (%p226_p3) target bundleno = 255 (0xff), region = 40  ;;  %v345_v2 = vsel (!%p226_p3), %vm343_vm0, 4294967295, %v719_v1  ;;  %v423_v3 = vld [vmem:[%s808_s3] sm:$0x3] (!%p226_p3)  ;;  %v720_v5 = vmov (!%p226_p3), 0.0   ;;  %vm721_vm2 = vmmov (!%p226_p3), 0  }
   0x8   : > { %v346_v4 = vsel (!%p226_p3), %vm344_vm1, %v345_v2, 0  ;;  %657 = vmatprep.subr.bf16.mxu1 (!%p226_p3), %v720_v5  ;;  %659 = vmatprep.mubr.msk.bf16.mxu1 (!%p226_p3), %vm721_vm2, %v720_v5  ;;  %vm330_vm3 = vcmask (!%p226_p3), 23552   ;;  %v623_v23 = vld [vmem:[%s809_s4] ss:$0 sm:$0xff] (!%p226_p3) }
   0x9   : > { %v348_v6 = vand.u32 (!%p226_p3), %v346_v4, %v309_v0  ;;  %v440_v7 = vand.u32 (!%p226_p3), %v423_v3, %v346_v4 }
   0xb   : > { %647 = vmatprep.subr.bf16.mxu0 (!%p226_p3), %v348_v6  ;;  %658 = vmatpush3.bf16.msra.mxu1 (!%p226_p3), %v440_v7 }
   0xc   : > { %648 = vmatpush3.bf16.msra.mxu0 (!%p226_p3), %v348_v6 }
   0xe   : > { %s816_s18 = smov (!%p271_p4, %s709_s18), 1 }
   0xf   : > { %s630_s26 = sshll.u32 %s816_s18, 5  ;;  %s631_s27 = sshll.u32 %s816_s18, 3 }
  0x10   : > { %s278_s30 = scalar_lea.vmem %s805_s0, %s630_s26  ;;  %s288_s8 = scalar_lea.vmem %s806_s1, %s631_s27 }
  0x11   : > { %v690_v8 = vld [vmem:[%s278_s30] sm:$0xff]   ;;  %v691_v9 = vld [vmem:[%s278_s30 + $0x8] sm:$0xff]   ;;  %v692_v10 = vld [vmem:[%s278_s30 + $0x10] sm:$0xff]   ;;  %s298_s13 = scalar_lea.vmem %s810_s5, %s631_s27 }
  0x12   : > { %649 = vmatprep.mubr.msk.bf16.mxu0 %vm330_vm3, %v690_v8  ;;  %v694_v11 = vld [vmem:[%s288_s8] sm:$0xff]   ;;  %v693_v12 = vld [vmem:[%s278_s30 + $0x18] sm:$0xff]  }
  0x13   : > { %650 = vmatmul.mubr.msk.bf16.vlgmr.msra.gmra.mrb[0].mxu0 %vm330_vm3, %v691_v9  ;;  %660 = vmatmul.mubr.msk.bf16.vlgmr.msra.gmra.mrb[0].mxu1 %vm330_vm3, %v694_v11 }
  0x14   : > { %653 = vmatprep.mubr.msk.bf16.mxu0 %vm330_vm3, %v692_v10 }
  0x1b   : > { %654 = vmatmul.mubr.msk.bf16.gmra.mrb[4].mxu0 %vm330_vm3, %v693_v12 }
  0xe6   : > { %v651_v13 = vpop.f32.mrb[0].mxu0  ;;  %v476_v18 = vpop.f32.mrb[0].mxu1 }
  0xe7   : > { %v384_v14 = vpop.f32.mrb[1].mxu0  ;;  %v661_v20 = vpop.f32.mrb[1].mxu1  ;;  %v477_v26 = vadd.f32 %v623_v23, %v476_v18 }
  0xe8   : > { %v415_v15 = vmax.f32 %v384_v14, %v651_v13  ;;  %v652_v16 = vpop.f32.mrb[2].mxu0  ;;  %v479_v21 = vpop.f32.mrb[2].mxu1 }
  0xe9   : > { %v387_v17 = vpop.f32.mrb[3].mxu0  ;;  %v662_v22 = vpop.f32.mrb[3].mxu1  ;;  %v480_v33 = vadd.f32 %v623_v23, %v479_v21 }
  0xea   : > { %v416_v19 = vmax.f32 %v387_v17, %v652_v16 }
  0xee   : > { %v655_v24 = vpop.f32.mrb[4].mxu0 }
  0xef   : > { %v400_v25 = vpop.f32.mrb[5].mxu0 }
  0xf0   : > { %v417_v27 = vmax.f32 %v415_v15, %v400_v25  ;;  %v656_v28 = vpop.f32.mrb[6].mxu0 }
  0xf1   : > { %v403_v29 = vpop.f32.mrb[7].mxu0 }
  0xf2   : > { %v419_v30 = vmax.f32 %v417_v27, %v655_v24  ;;  %v418_v31 = vmax.f32 %v416_v19, %v403_v29 }
  0xf4   : > { %v483_v32 = vadd.f32 %v477_v26, %v419_v30  ;;  %v420_v34 = vmax.f32 %v418_v31, %v656_v28 }
  0xf6   : > { %v485_v35 = vmul.f32 0.2, %v483_v32  ;;  %v484_v36 = vadd.f32 %v480_v33, %v420_v34 }
  0xf8   : > { %v486_v37 = vmul.f32 0.2, %v484_v36  ;;  %v487_v38 = vmax.f32 %v483_v32, %v485_v35 }
  0xfa   : > { %v488_v39 = vmax.f32 %v484_v36, %v486_v37 }
  0xfc   : > { %v638_v40 = vpack.c.bf16 %v488_v39, %v487_v38 }
  0xfe   : > { %639 = vst [vmem:[%s298_s13] sm:$0xff] %v638_v40  }
  0xff PF: > { %s15_s20 = sadd.s32 1, %s717_s20   ;;  %s811_s18 = smov %s713_s19 }
 0x100   : > { %p12_p5 = scmp.ge.s32.totalorder %s15_s20, 4   ;;  %s812_s19 = smov %s814_s21 }
 0x102   :  { %14 = sbr.rel (!%p12_p5) target bundleno = 2 (0x2), region = 73 }

// kernel: _lambda_.8
= control target key start
LH: loop header
LB: loop body
LE: loop exit
PB: predicated region body
PF: predicated region fallthrough
CT: control target
= control target key end

     0   :  { %s594_s9 = smov 0   ;;  %s596_s10 = smov 0   ;;  %s710_s0 = inlined_call_operand.vmem [shape: bf16[2,16,3], index: 0, kind: input, shape index: {}]   ;;  %s711_s1 = inlined_call_operand.vmem [shape: f32[2,1,16], index: 1, kind: input, shape index: {}]   ;;  %s712_s2 = inlined_call_operand.vmem [shape: s32[2,16,4], index: 2, kind: output, shape index: {}]  }
   0x1   :  { %s598_s11 = smov 0  }
   0x2 LB: > { %s24_s12 = sadd.s32 1, %s571_s10  ;;  %p487_p0 = scmp.ge.s32.totalorder %s575_s11, 1  ;;  %s575_s11 = sphi %s598_s11, %s12_s11   ;;  %s571_s10 = sphi %s596_s10, %s714_s10   ;;  %s567_s9 = sphi %s594_s9, %s713_s9  }
   0x3   : > { %p26_p1 = scmp.ge.s32.totalorder %s24_s12, 2  ;;  %p134_p2 = scmp.lt.s32.totalorder %s575_s11, 3 }
   0x5   : > { %s716_s12 = smov (%p26_p1, %s24_s12), 0  ;;  %p135_p3 = pnand %p487_p0, %p134_p2 }
   0x6   : > { %p163_p4 = scmp.lt.s32.totalorder (!%p135_p3), %s567_s9, 1  ;;  %v577_v0 = vmov (!%p135_p3), 0.0   ;;  %vm578_vm0 = vmmov (!%p135_p3), 0   ;;  %vm201_vm1 = vcmask (!%p135_p3), 23552   ;;  %vm272_vm2 = vcmask (!%p135_p3), 130048  }
   0x7   : > { %138 = sbr.rel (%p135_p3) target bundleno = 1444 (0x5a4), region = 28  ;;  %502 = vmatprep.subr.bf16.mxu0 (!%p135_p3), %v577_v0  ;;  %504 = vmatprep.mubr.msk.bf16.mxu0 (!%p135_p3), %vm578_vm0, %v577_v0  ;;  %v275_v27 = vlaneseq (!%p135_p3) }
   0x9   : > { %v626_v28 = vand.u32 (!%p135_p3), 127, %v275_v27 }
   0xb   : > { %v629_v29 = vcvt.s32.f32 (!%p135_p3), %v626_v28 }
   0xe   : > { %s718_s9 = smov (!%p163_p4, %s567_s9), 1 }
   0xf   : > { %s498_s13 = sshll.u32 %s718_s9, 3  ;;  %s170_s19 = scalar_lea.vmem %s711_s1, %s718_s9 }
  0x10   : > { %s167_s16 = scalar_lea.vmem %s710_s0, %s498_s13  ;;  %v495_v15 = vld [vmem:[%s170_s19] ss:$0 sm:$0xff]  ;;  %s499_s20 = sshll.u32 %s718_s9, 4 }
  0x11   : > { %v550_v1 = vld [vmem:[%s167_s16] sm:$0xff]   ;;  %s179_s23 = scalar_lea.vmem %s712_s2, %s499_s20 }
  0x12   : > { %v187_v2 = vld [vmem:[%s167_s16] sm:$0xff]   ;;  %v206_v3 = vsel %vm201_vm1, %v550_v1, 0 }
  0x13   : > { %v249_v4 = vunpack.c.l.bf16 %v187_v2  ;;  %v250_v5 = vunpack.c.h.bf16 %v187_v2  ;;  %503 = vmatpush3.bf16.xpose.msra.mxu0 %v206_v3 }
  0x15   : > { %v251_v6 = vmul.f32 %v249_v4, %v249_v4  ;;  %v252_v7 = vmul.f32 %v250_v5, %v250_v5 }
  0x17   : > { %v253_v8 = vsel %vm201_vm1, %v251_v6, 0.0  ;;  %v256_v9 = vsel %vm201_vm1, %v252_v7, 0.0 }
  0x18   : > { %254 = vadd.xlane.f32.xlu0 %v253_v8 }
  0x1a   : > { %505 = vmatmul.mubr.msk.bf16.vlgmr.msra.gmra.mrb[0].mxu0 %vm201_vm1, %v187_v2  ;;  %vm298_vm1 = vcmp.eq.s32.totalorder %v626_v28, 0 }
  0x1c   : > { %257 = vadd.xlane.f32.xlu0 %v256_v9 }
  0xa5   : > { %v255_v10 = vpop.xlane.xlu0 %254 }
  0xa9   : > { %v258_v16 = vpop.xlane.xlu0 %257 }
  0xed   : > { %v242_v11 = vpop.f32.mrb[0].mxu0 }
  0xee   : > { %v259_v12 = vmul.f32 2.0, %v242_v11  ;;  %v506_v13 = vpop.f32.mrb[1].mxu0 }
  0xef   : > { %v245_v14 = vpop.f32.mrb[2].mxu0 }
  0xf0   : > { %v261_v17 = vsub.f32 %v259_v12, %v255_v10  ;;  %v260_v18 = vmul.f32 2.0, %v245_v14  ;;  %v507_v19 = vpop.f32.mrb[3].mxu0 }
  0xf2   : > { %v262_v20 = vsub.f32 %v260_v18, %v258_v16  ;;  %v270_v21 = vsub.f32 %v261_v17, %v495_v15 }
  0xf4   : > { %v271_v22 = vsub.f32 %v262_v20, %v495_v15  ;;  %273 = vst.msk [vmem:[#allocation2] sm:$0xff] %vm272_vm2, %v270_v21 }
  0xf6   : > { %274 = vst.msk [vmem:[#allocation2 + $0x8] sm:$0xff] %vm272_vm2, %v271_v22 }
  0xfb   : > { %v278_v23 = vld [vmem:[#allocation2] sm:$0xff] }
  0xfc   : > { %v280_v24 = vsel %vm272_vm2, %v278_v23, -inf }
  0xfd   : > { %281 = vmax.xlane.f32.xlu1 %v280_v24  ;;  %v279_v25 = vld [vmem:[#allocation2 + $0x8] sm:$0xff] }
  0xfe   : > { %v283_v26 = vsel %vm272_vm2, %v279_v25, -inf }
 0x101   : > { %284 = vmax.xlane.f32.xlu1 %v283_v26 }
 0x18a   : > { %v282_v30 = vpop.xlane.xlu1 %281 }
 0x18b   : > { %vm286_vm3 = vcmp.eq.f32.partialorder %v278_v23, %v282_v30 }
 0x18c   : > { %v288_v31 = vsel %vm286_vm3, %v629_v29, 16.0  ;;  %vm327_vm3 = vcmp.eq.s32.totalorder %v626_v28, 1 }
 0x18d   : > { %v290_v32 = vsel %vm272_vm2, %v288_v31, inf }
 0x18e   : > { %291 = vmin.xlane.f32.xlu0 %v290_v32  ;;  %v285_v33 = vpop.xlane.xlu1 %284 }
 0x18f   : > { %vm287_vm4 = vcmp.eq.f32.partialorder %v279_v25, %v285_v33 }
 0x190   : > { %v289_v34 = vsel %vm287_vm4, %v629_v29, 16.0  ;;  %vm385_vm4 = vcmp.eq.s32.totalorder %v626_v28, 3 }
 0x191   : > { %v293_v35 = vsel %vm272_vm2, %v289_v34, inf }
 0x192   : > { %294 = vmin.xlane.f32.xlu1 %v293_v35 }
 0x21b   : > { %v635_v36 = vpop.xlane.xlu0 %291 }
 0x21c   : > { %vm301_vm5 = vcmp.eq.f32.partialorder %v629_v29, %v635_v36  ;;  %v508_v14 = vtrunc.f32 %v635_v36 }
 0x21d   : > { %v303_v37 = vsel %vm301_vm5, -inf, %v278_v23  ;;  %vm388_vm5 = vcmask 31744  }
 0x21e   : > { %305 = vst.msk [vmem:[#allocation2] sm:$0xff] %vm272_vm2, %v303_v37  ;;  %v509_v17 = vcvt.f32.s32 %v508_v14 }
 0x21f   : > { %v640_v38 = vpop.xlane.xlu1 %294 }
 0x220   : > { %vm302_vm6 = vcmp.eq.f32.partialorder %v629_v29, %v640_v38  ;;  %v510_v18 = vtrunc.f32 %v640_v38 }
 0x221   : > { %v304_v39 = vsel %vm302_vm6, -inf, %v279_v25  ;;  %v299_v25 = vsel %vm298_vm1, %v509_v17, 0 }
 0x222   : > { %306 = vst.msk [vmem:[#allocation2 + $0x8] sm:$0xff] %vm272_vm2, %v304_v39  ;;  %v511_v26 = vcvt.f32.s32 %v510_v18 }
 0x224   : > { %v300_v36 = vsel %vm298_vm1, %v511_v26, 0 }
 0x225   : > { %v307_v40 = vld [vmem:[#allocation2] sm:$0xff] }
 0x226   : > { %v309_v41 = vsel %vm272_vm2, %v307_v40, -inf }
 0x227   : > { %310 = vmax.xlane.f32.xlu0 %v309_v41 }
 0x229   : > { %v308_v42 = vld [vmem:[#allocation2 + $0x8] sm:$0xff] }
 0x22a   : > { %v312_v43 = vsel %vm272_vm2, %v308_v42, -inf }
 0x22b   : > { %313 = vmax.xlane.f32.xlu1 %v312_v43 }
 0x2b4   : > { %v311_v44 = vpop.xlane.xlu0 %310 }
 0x2b5   : > { %vm315_vm7 = vcmp.eq.f32.partialorder %v307_v40, %v311_v44 }
 0x2b6   : > { %v317_v45 = vsel %vm315_vm7, %v629_v29, 16.0 }
 0x2b7   : > { %v319_v46 = vsel %vm272_vm2, %v317_v45, inf }
 0x2b8   : > { %320 = vmin.xlane.f32.xlu0 %v319_v46  ;;  %v314_v47 = vpop.xlane.xlu1 %313 }
 0x2b9   : > { %vm316_vm8 = vcmp.eq.f32.partialorder %v308_v42, %v314_v47 }
 0x2ba   : > { %v318_v48 = vsel %vm316_vm8, %v629_v29, 16.0 }
 0x2bb   : > { %v322_v49 = vsel %vm272_vm2, %v318_v48, inf }
 0x2bc   : > { %323 = vmin.xlane.f32.xlu1 %v322_v49 }
 0x345   : > { %v321_v50 = vpop.xlane.xlu0 %320 }
 0x346   : > { %vm330_vm9 = vcmp.eq.f32.partialorder %v629_v29, %v321_v50  ;;  %v512_v15 = vtrunc.f32 %v321_v50 }
 0x347   : > { %v332_v51 = vsel %vm330_vm9, -inf, %v307_v40 }
 0x348   : > { %334 = vst.msk [vmem:[#allocation2] sm:$0xff] %vm272_vm2, %v332_v51  ;;  %v513_v19 = vcvt.f32.s32 %v512_v15 }
 0x349   : > { %v653_v52 = vpop.xlane.xlu1 %323 }
 0x34a   : > { %vm331_vm10 = vcmp.eq.f32.partialorder %v629_v29, %v653_v52  ;;  %v514_v20 = vtrunc.f32 %v653_v52  ;;  %v328_v27 = vsel %vm327_vm3, %v513_v19, %v299_v25 }
 0x34b   : > { %v333_v53 = vsel %vm331_vm10, -inf, %v308_v42 }
 0x34c   : > { %335 = vst.msk [vmem:[#allocation2 + $0x8] sm:$0xff] %vm272_vm2, %v333_v53 }
 0x34f   : > { %v336_v54 = vld [vmem:[#allocation2] sm:$0xff] }
 0x350   : > { %v338_v55 = vsel %vm272_vm2, %v336_v54, -inf }
 0x351   : > { %339 = vmax.xlane.f32.xlu0 %v338_v55 }
 0x353   : > { %v337_v56 = vld [vmem:[#allocation2 + $0x8] sm:$0xff] }
 0x354   : > { %v341_v57 = vsel %vm272_vm2, %v337_v56, -inf }
 0x355   : > { %342 = vmax.xlane.f32.xlu1 %v341_v57 }
 0x3de   : > { %v340_v58 = vpop.xlane.xlu0 %339 }
 0x3df   : > { %vm344_vm11 = vcmp.eq.f32.partialorder %v336_v54, %v340_v58 }
 0x3e0   : > { %v346_v59 = vsel %vm344_vm11, %v629_v29, 16.0 }
 0x3e1   : > { %v348_v60 = vsel %vm272_vm2, %v346_v59, inf }
 0x3e2   : > { %349 = vmin.xlane.f32.xlu0 %v348_v60  ;;  %v343_v61 = vpop.xlane.xlu1 %342 }
 0x3e3   : > { %vm345_vm12 = vcmp.eq.f32.partialorder %v337_v56, %v343_v61 }
 0x3e4   : > { %v347_v62 = vsel %vm345_vm12, %v629_v29, 16.0 }
 0x3e5   : > { %v351_v63 = vsel %vm272_vm2, %v347_v62, inf }
 0x3e6   : > { %352 = vmin.xlane.f32.xlu1 %v351_v63 }
 0x46f   : > { %v350_v0 = vpop.xlane.xlu0 %349 }
 0x470   : > { %vm359_vm13 = vcmp.eq.f32.partialorder %v629_v29, %v350_v0  ;;  %v516_v16 = vtrunc.f32 %v350_v0 }
 0x471   : > { %v361_v1 = vsel %vm359_vm13, -inf, %v336_v54 }
 0x472   : > { %363 = vst.msk [vmem:[#allocation2] sm:$0xff] %vm272_vm2, %v361_v1  ;;  %v517_v21 = vcvt.f32.s32 %v516_v16 }
 0x473   : > { %v353_v2 = vpop.xlane.xlu1 %352 }
 0x474   : > { %vm360_vm14 = vcmp.eq.f32.partialorder %v629_v29, %v353_v2  ;;  %v518_v22 = vtrunc.f32 %v353_v2 }
 0x475   : > { %v362_v3 = vsel %vm360_vm14, -inf, %v337_v56 }
 0x476   : > { %364 = vst.msk [vmem:[#allocation2 + $0x8] sm:$0xff] %vm272_vm2, %v362_v3  ;;  %v519_v32 = vcvt.f32.s32 %v518_v22 }
 0x479   : > { %v365_v4 = vld [vmem:[#allocation2] sm:$0xff] }
 0x47a   : > { %v367_v5 = vsel %vm272_vm2, %v365_v4, -inf }
 0x47b   : > { %368 = vmax.xlane.f32.xlu0 %v367_v5 }
 0x47d   : > { %v366_v6 = vld [vmem:[#allocation2 + $0x8] sm:$0xff] }
 0x47e   : > { %v370_v7 = vsel %vm272_vm2, %v366_v6, -inf }
 0x47f   : > { %371 = vmax.xlane.f32.xlu1 %v370_v7 }
 0x508   : > { %v369_v8 = vpop.xlane.xlu0 %368 }
 0x509   : > { %vm373_vm15 = vcmp.eq.f32.partialorder %v365_v4, %v369_v8 }
 0x50a   : > { %v375_v9 = vsel %vm373_vm15, %v629_v29, 16.0 }
 0x50b   : > { %v377_v10 = vsel %vm272_vm2, %v375_v9, inf }
 0x50c   : > { %378 = vmin.xlane.f32.xlu0 %v377_v10  ;;  %v372_v11 = vpop.xlane.xlu1 %371 }
 0x50d   : > { %vm374_vm0 = vcmp.eq.f32.partialorder %v366_v6, %v372_v11 }
 0x50e   : > { %v376_v12 = vsel %vm374_vm0, %v629_v29, 16.0  ;;  %v515_v29 = vcvt.f32.s32 %v514_v20 }
 0x50f   : > { %v380_v13 = vsel %vm272_vm2, %v376_v12, inf  ;;  %vm356_vm2 = vcmp.eq.s32.totalorder %v626_v28, 2 }
 0x510   : > { %381 = vmin.xlane.f32.xlu1 %v380_v13  ;;  %v357_v31 = vsel %vm356_vm2, %v517_v21, %v328_v27  ;;  %v329_v37 = vsel %vm327_vm3, %v515_v29, %v300_v36 }
 0x511   : > { %v358_v39 = vsel %vm356_vm2, %v519_v32, %v329_v37 }
 0x599   : > { %v379_v23 = vpop.xlane.xlu0 %378 }
 0x59a   : > { %v520_v24 = vtrunc.f32 %v379_v23 }
 0x59c   : > { %v521_v30 = vcvt.f32.s32 %v520_v24 }
 0x59d   : > { %v382_v33 = vpop.xlane.xlu1 %381 }
 0x59e   : > { %v386_v34 = vsel %vm385_vm4, %v521_v30, %v357_v31  ;;  %v522_v35 = vtrunc.f32 %v382_v33 }
 0x59f   : > { %389 = vst.msk [vmem:[%s179_s23] sm:$0xff] %vm388_vm5, %v386_v34 }
 0x5a0   : > { %v523_v38 = vcvt.f32.s32 %v522_v35 }
 0x5a2   : > { %v387_v40 = vsel %vm385_vm4, %v523_v38, %v358_v39 }
 0x5a3   : > { %390 = vst.msk [vmem:[%s179_s23 + $0x8] sm:$0xff] %vm388_vm5, %v387_v40 }
 0x5a4 PF: > { %s12_s11 = sadd.s32 1, %s575_s11   ;;  %s713_s9 = smov %s571_s10 }
 0x5a5   : > { %p9_p5 = scmp.ge.s32.totalorder %s12_s11, 4   ;;  %s714_s10 = smov %s716_s12 }
 0x5a7   :  { %11 = sbr.rel (!%p9_p5) target bundleno = 2 (0x2), region = 62 }

// kernel: _lambda_.10
= control target key start
LH: loop header
LB: loop body
LE: loop exit
PB: predicated region body
PF: predicated region fallthrough
CT: control target
= control target key end

     0   :  { %s586_s9 = smov 0   ;;  %s588_s10 = smov 0   ;;  %s702_s0 = inlined_call_operand.vmem [shape: bf16[2,16,128], index: 0, kind: input, shape index: {}]   ;;  %s703_s1 = inlined_call_operand.vmem [shape: f32[2,1,16], index: 1, kind: input, shape index: {}]   ;;  %s704_s2 = inlined_call_operand.vmem [shape: s32[2,16,4], index: 2, kind: output, shape index: {}]  }
   0x1   :  { %s590_s11 = smov 0  }
   0x2 LB: > { %s24_s12 = sadd.s32 1, %s563_s10  ;;  %p480_p0 = scmp.ge.s32.totalorder %s567_s11, 1  ;;  %s567_s11 = sphi %s590_s11, %s12_s11   ;;  %s563_s10 = sphi %s588_s10, %s706_s10   ;;  %s559_s9 = sphi %s586_s9, %s705_s9  }
   0x3   : > { %p26_p1 = scmp.ge.s32.totalorder %s24_s12, 2  ;;  %p134_p2 = scmp.lt.s32.totalorder %s567_s11, 3 }
   0x5   : > { %s708_s12 = smov (%p26_p1, %s24_s12), 0  ;;  %p135_p3 = pnand %p480_p0, %p134_p2 }
   0x6   : > { %p163_p4 = scmp.lt.s32.totalorder (!%p135_p3), %s559_s9, 1  ;;  %v569_v0 = vmov (!%p135_p3), 0.0   ;;  %vm570_vm0 = vmmov (!%p135_p3), 0   ;;  %vm265_vm1 = vcmask (!%p135_p3), 130048   ;;  %v268_v24 = vlaneseq (!%p135_p3) }
   0x7   : > { %138 = sbr.rel (%p135_p3) target bundleno = 1443 (0x5a3), region = 28  ;;  %494 = vmatprep.subr.bf16.mxu0 (!%p135_p3), %v569_v0  ;;  %496 = vmatprep.mubr.msk.bf16.mxu0 (!%p135_p3), %vm570_vm0, %v569_v0 }
   0x8   : > { %v618_v25 = vand.u32 (!%p135_p3), 127, %v268_v24 }
   0xa   : > { %v621_v26 = vcvt.s32.f32 (!%p135_p3), %v618_v25  ;;  %vm291_vm0 = vcmp.eq.s32.totalorder (!%p135_p3), %v618_v25, 0 }
   0xe   : > { %s710_s9 = smov (!%p163_p4, %s559_s9), 1 }
   0xf   : > { %s490_s13 = sshll.u32 %s710_s9, 3  ;;  %s170_s19 = scalar_lea.vmem %s703_s1, %s710_s9 }
  0x10   : > { %s167_s16 = scalar_lea.vmem %s702_s0, %s490_s13  ;;  %v487_v12 = vld [vmem:[%s170_s19] ss:$0 sm:$0xff]  ;;  %s491_s20 = sshll.u32 %s710_s9, 4 }
  0x11   : > { %v542_v1 = vld [vmem:[%s167_s16] sm:$0xff]   ;;  %s179_s23 = scalar_lea.vmem %s704_s2, %s491_s20 }
  0x12   : > { %v187_v2 = vld [vmem:[%s167_s16] sm:$0xff]   ;;  %495 = vmatpush3.bf16.xpose.msra.mxu0 %v542_v1 }
  0x13   : > { %v244_v3 = vunpack.c.l.bf16 %v187_v2  ;;  %v245_v4 = vunpack.c.h.bf16 %v187_v2 }
  0x15   : > { %v246_v5 = vmul.f32 %v244_v3, %v244_v3  ;;  %v247_v6 = vmul.f32 %v245_v4, %v245_v4 }
  0x17   : > { %248 = vadd.xlane.f32.xlu0 %v246_v5 }
  0x19   : > { %497 = vmatmul.mubr.bf16.vlgmr.msra.gmra.mrb[0].mxu0 %v187_v2 }
  0x1b   : > { %250 = vadd.xlane.f32.xlu0 %v247_v6 }
  0xa4   : > { %v249_v7 = vpop.xlane.xlu0 %248 }
  0xa8   : > { %v251_v13 = vpop.xlane.xlu0 %250 }
  0xec   : > { %v237_v8 = vpop.f32.mrb[0].mxu0 }
  0xed   : > { %v252_v9 = vmul.f32 2.0, %v237_v8  ;;  %v498_v10 = vpop.f32.mrb[1].mxu0 }
  0xee   : > { %v240_v11 = vpop.f32.mrb[2].mxu0 }
  0xef   : > { %v254_v14 = vsub.f32 %v252_v9, %v249_v7  ;;  %v253_v15 = vmul.f32 2.0, %v240_v11  ;;  %v499_v16 = vpop.f32.mrb[3].mxu0 }
  0xf1   : > { %v255_v17 = vsub.f32 %v253_v15, %v251_v13  ;;  %v263_v18 = vsub.f32 %v254_v14, %v487_v12 }
  0xf3   : > { %v264_v19 = vsub.f32 %v255_v17, %v487_v12  ;;  %266 = vst.msk [vmem:[#allocation2] sm:$0xff] %vm265_vm1, %v263_v18 }
  0xf5   : > { %267 = vst.msk [vmem:[#allocation2 + $0x8] sm:$0xff] %vm265_vm1, %v264_v19 }
  0xfa   : > { %v271_v20 = vld [vmem:[#allocation2] sm:$0xff] }
  0xfb   : > { %v273_v21 = vsel %vm265_vm1, %v271_v20, -inf }
  0xfc   : > { %274 = vmax.xlane.f32.xlu1 %v273_v21  ;;  %v272_v22 = vld [vmem:[#allocation2 + $0x8] sm:$0xff] }
  0xfd   : > { %v276_v23 = vsel %vm265_vm1, %v272_v22, -inf }
 0x100   : > { %277 = vmax.xlane.f32.xlu1 %v276_v23 }
 0x189   : > { %v275_v27 = vpop.xlane.xlu1 %274 }
 0x18a   : > { %vm279_vm2 = vcmp.eq.f32.partialorder %v271_v20, %v275_v27 }
 0x18b   : > { %v281_v28 = vsel %vm279_vm2, %v621_v26, 16.0  ;;  %vm320_vm2 = vcmp.eq.s32.totalorder %v618_v25, 1 }
 0x18c   : > { %v283_v29 = vsel %vm265_vm1, %v281_v28, inf }
 0x18d   : > { %284 = vmin.xlane.f32.xlu0 %v283_v29  ;;  %v278_v30 = vpop.xlane.xlu1 %277 }
 0x18e   : > { %vm280_vm3 = vcmp.eq.f32.partialorder %v272_v22, %v278_v30 }
 0x18f   : > { %v282_v31 = vsel %vm280_vm3, %v621_v26, 16.0  ;;  %vm378_vm3 = vcmp.eq.s32.totalorder %v618_v25, 3 }
 0x190   : > { %v286_v32 = vsel %vm265_vm1, %v282_v31, inf }
 0x191   : > { %287 = vmin.xlane.f32.xlu1 %v286_v32 }
 0x21a   : > { %v627_v33 = vpop.xlane.xlu0 %284 }
 0x21b   : > { %vm294_vm4 = vcmp.eq.f32.partialorder %v621_v26, %v627_v33  ;;  %v500_v11 = vtrunc.f32 %v627_v33 }
 0x21c   : > { %v296_v34 = vsel %vm294_vm4, -inf, %v271_v20  ;;  %vm381_vm4 = vcmask 31744  }
 0x21d   : > { %298 = vst.msk [vmem:[#allocation2] sm:$0xff] %vm265_vm1, %v296_v34  ;;  %v501_v14 = vcvt.f32.s32 %v500_v11 }
 0x21e   : > { %v632_v35 = vpop.xlane.xlu1 %287 }
 0x21f   : > { %vm295_vm5 = vcmp.eq.f32.partialorder %v621_v26, %v632_v35  ;;  %v502_v15 = vtrunc.f32 %v632_v35 }
 0x220   : > { %v297_v36 = vsel %vm295_vm5, -inf, %v272_v22  ;;  %v292_v22 = vsel %vm291_vm0, %v501_v14, 0 }
 0x221   : > { %299 = vst.msk [vmem:[#allocation2 + $0x8] sm:$0xff] %vm265_vm1, %v297_v36  ;;  %v503_v23 = vcvt.f32.s32 %v502_v15 }
 0x223   : > { %v293_v33 = vsel %vm291_vm0, %v503_v23, 0 }
 0x224   : > { %v300_v37 = vld [vmem:[#allocation2] sm:$0xff] }
 0x225   : > { %v302_v38 = vsel %vm265_vm1, %v300_v37, -inf }
 0x226   : > { %303 = vmax.xlane.f32.xlu0 %v302_v38 }
 0x228   : > { %v301_v39 = vld [vmem:[#allocation2 + $0x8] sm:$0xff] }
 0x229   : > { %v305_v40 = vsel %vm265_vm1, %v301_v39, -inf }
 0x22a   : > { %306 = vmax.xlane.f32.xlu1 %v305_v40 }
 0x2b3   : > { %v304_v41 = vpop.xlane.xlu0 %303 }
 0x2b4   : > { %vm308_vm6 = vcmp.eq.f32.partialorder %v300_v37, %v304_v41 }
 0x2b5   : > { %v310_v42 = vsel %vm308_vm6, %v621_v26, 16.0 }
 0x2b6   : > { %v312_v43 = vsel %vm265_vm1, %v310_v42, inf }
 0x2b7   : > { %313 = vmin.xlane.f32.xlu0 %v312_v43  ;;  %v307_v44 = vpop.xlane.xlu1 %306 }
 0x2b8   : > { %vm309_vm7 = vcmp.eq.f32.partialorder %v301_v39, %v307_v44 }
 0x2b9   : > { %v311_v45 = vsel %vm309_vm7, %v621_v26, 16.0 }
 0x2ba   : > { %v315_v46 = vsel %vm265_vm1, %v311_v45, inf }
 0x2bb   : > { %316 = vmin.xlane.f32.xlu1 %v315_v46 }
 0x344   : > { %v314_v47 = vpop.xlane.xlu0 %313 }
 0x345   : > { %vm323_vm8 = vcmp.eq.f32.partialorder %v621_v26, %v314_v47  ;;  %v504_v12 = vtrunc.f32 %v314_v47 }
 0x346   : > { %v325_v48 = vsel %vm323_vm8, -inf, %v300_v37 }
 0x347   : > { %327 = vst.msk [vmem:[#allocation2] sm:$0xff] %vm265_vm1, %v325_v48  ;;  %v505_v16 = vcvt.f32.s32 %v504_v12 }
 0x348   : > { %v645_v49 = vpop.xlane.xlu1 %316 }
 0x349   : > { %vm324_vm9 = vcmp.eq.f32.partialorder %v621_v26, %v645_v49  ;;  %v506_v17 = vtrunc.f32 %v645_v49  ;;  %v321_v24 = vsel %vm320_vm2, %v505_v16, %v292_v22 }
 0x34a   : > { %v326_v50 = vsel %vm324_vm9, -inf, %v301_v39 }
 0x34b   : > { %328 = vst.msk [vmem:[#allocation2 + $0x8] sm:$0xff] %vm265_vm1, %v326_v50 }
 0x34e   : > { %v329_v51 = vld [vmem:[#allocation2] sm:$0xff] }
 0x34f   : > { %v331_v52 = vsel %vm265_vm1, %v329_v51, -inf }
 0x350   : > { %332 = vmax.xlane.f32.xlu0 %v331_v52 }
 0x352   : > { %v330_v53 = vld [vmem:[#allocation2 + $0x8] sm:$0xff] }
 0x353   : > { %v334_v54 = vsel %vm265_vm1, %v330_v53, -inf }
 0x354   : > { %335 = vmax.xlane.f32.xlu1 %v334_v54 }
 0x3dd   : > { %v333_v55 = vpop.xlane.xlu0 %332 }
 0x3de   : > { %vm337_vm10 = vcmp.eq.f32.partialorder %v329_v51, %v333_v55 }
 0x3df   : > { %v339_v56 = vsel %vm337_vm10, %v621_v26, 16.0 }
 0x3e0   : > { %v341_v57 = vsel %vm265_vm1, %v339_v56, inf }
 0x3e1   : > { %342 = vmin.xlane.f32.xlu0 %v341_v57  ;;  %v336_v58 = vpop.xlane.xlu1 %335 }
 0x3e2   : > { %vm338_vm11 = vcmp.eq.f32.partialorder %v330_v53, %v336_v58 }
 0x3e3   : > { %v340_v59 = vsel %vm338_vm11, %v621_v26, 16.0 }
 0x3e4   : > { %v344_v60 = vsel %vm265_vm1, %v340_v59, inf }
 0x3e5   : > { %345 = vmin.xlane.f32.xlu1 %v344_v60 }
 0x46e   : > { %v343_v61 = vpop.xlane.xlu0 %342 }
 0x46f   : > { %vm352_vm12 = vcmp.eq.f32.partialorder %v621_v26, %v343_v61  ;;  %v508_v13 = vtrunc.f32 %v343_v61 }
 0x470   : > { %v354_v62 = vsel %vm352_vm12, -inf, %v329_v51 }
 0x471   : > { %356 = vst.msk [vmem:[#allocation2] sm:$0xff] %vm265_vm1, %v354_v62  ;;  %v509_v18 = vcvt.f32.s32 %v508_v13 }
 0x472   : > { %v346_v63 = vpop.xlane.xlu1 %345 }
 0x473   : > { %vm353_vm13 = vcmp.eq.f32.partialorder %v621_v26, %v346_v63  ;;  %v510_v19 = vtrunc.f32 %v346_v63 }
 0x474   : > { %v355_v0 = vsel %vm353_vm13, -inf, %v330_v53 }
 0x475   : > { %357 = vst.msk [vmem:[#allocation2 + $0x8] sm:$0xff] %vm265_vm1, %v355_v0  ;;  %v511_v29 = vcvt.f32.s32 %v510_v19 }
 0x478   : > { %v358_v1 = vld [vmem:[#allocation2] sm:$0xff] }
 0x479   : > { %v360_v2 = vsel %vm265_vm1, %v358_v1, -inf }
 0x47a   : > { %361 = vmax.xlane.f32.xlu0 %v360_v2 }
 0x47c   : > { %v359_v3 = vld [vmem:[#allocation2 + $0x8] sm:$0xff] }
 0x47d   : > { %v363_v4 = vsel %vm265_vm1, %v359_v3, -inf }
 0x47e   : > { %364 = vmax.xlane.f32.xlu1 %v363_v4 }
 0x507   : > { %v362_v5 = vpop.xlane.xlu0 %361 }
 0x508   : > { %vm366_vm14 = vcmp.eq.f32.partialorder %v358_v1, %v362_v5 }
 0x509   : > { %v368_v6 = vsel %vm366_vm14, %v621_v26, 16.0 }
 0x50a   : > { %v370_v7 = vsel %vm265_vm1, %v368_v6, inf }
 0x50b   : > { %371 = vmin.xlane.f32.xlu0 %v370_v7  ;;  %v365_v8 = vpop.xlane.xlu1 %364 }
 0x50c   : > { %vm367_vm15 = vcmp.eq.f32.partialorder %v359_v3, %v365_v8 }
 0x50d   : > { %v369_v9 = vsel %vm367_vm15, %v621_v26, 16.0  ;;  %v507_v26 = vcvt.f32.s32 %v506_v17 }
 0x50e   : > { %v373_v10 = vsel %vm265_vm1, %v369_v9, inf  ;;  %vm349_vm1 = vcmp.eq.s32.totalorder %v618_v25, 2 }
 0x50f   : > { %374 = vmin.xlane.f32.xlu1 %v373_v10  ;;  %v350_v28 = vsel %vm349_vm1, %v509_v18, %v321_v24  ;;  %v322_v34 = vsel %vm320_vm2, %v507_v26, %v293_v33 }
 0x510   : > { %v351_v36 = vsel %vm349_vm1, %v511_v29, %v322_v34 }
 0x598   : > { %v372_v20 = vpop.xlane.xlu0 %371 }
 0x599   : > { %v512_v21 = vtrunc.f32 %v372_v20 }
 0x59b   : > { %v513_v27 = vcvt.f32.s32 %v512_v21 }
 0x59c   : > { %v375_v30 = vpop.xlane.xlu1 %374 }
 0x59d   : > { %v379_v31 = vsel %vm378_vm3, %v513_v27, %v350_v28  ;;  %v514_v32 = vtrunc.f32 %v375_v30 }
 0x59e   : > { %382 = vst.msk [vmem:[%s179_s23] sm:$0xff] %vm381_vm4, %v379_v31 }
 0x59f   : > { %v515_v35 = vcvt.f32.s32 %v514_v32 }
 0x5a1   : > { %v380_v37 = vsel %vm378_vm3, %v515_v35, %v351_v36 }
 0x5a2   : > { %383 = vst.msk [vmem:[%s179_s23 + $0x8] sm:$0xff] %vm381_vm4, %v380_v37 }
 0x5a3 PF: > { %s12_s11 = sadd.s32 1, %s567_s11   ;;  %s705_s9 = smov %s563_s10 }
 0x5a4   : > { %p9_p5 = scmp.ge.s32.totalorder %s12_s11, 4   ;;  %s706_s10 = smov %s708_s12 }
 0x5a6   :  { %11 = sbr.rel (!%p9_p5) target bundleno = 2 (0x2), region = 62 }

// kernel: _lambda_.11
= control target key start
LH: loop header
LB: loop body
LE: loop exit
PB: predicated region body
PF: predicated region fallthrough
CT: control target
= control target key end

     0   :  { %s924_s18 = smov 0   ;;  %s926_s19 = smov 0   ;;  %s1025_s0 = inlined_call_operand.vmem [shape: bf16[2,4,16,128], index: 0, kind: input, shape index: {}]   ;;  %s1026_s1 = inlined_call_operand.vmem [shape: bf16[2,16,128], index: 1, kind: input, shape index: {}]   ;;  %s1027_s2 = inlined_call_operand.vmem [shape: bf16[128,128], index: 2, kind: input, shape index: {}]   ;;  %s1028_s3 = inlined_call_operand.vmem [shape: bf16[128,128], index: 3, kind: input, shape index: {}]   ;;  %s1029_s4 = inlined_call_operand.vmem [shape: f32[1,128], index: 4, kind: input, shape index: {}]   ;;  %s1030_s5 = inlined_call_operand.vmem [shape: bf16[2,16,128], index: 5, kind: output, shape index: {}]  }
   0x1   :  { %s928_s20 = smov 0  }
   0x2 LB: > { %s27_s21 = sadd.s32 1, %s886_s19  ;;  %p713_p0 = scmp.ge.s32.totalorder %s890_s20, 1  ;;  %s890_s20 = sphi %s928_s20, %s15_s20   ;;  %s886_s19 = sphi %s926_s19, %s1032_s19   ;;  %s882_s18 = sphi %s924_s18, %s1031_s18  }
   0x3   : > { %p29_p1 = scmp.ge.s32.totalorder %s27_s21, 2  ;;  %p225_p2 = scmp.lt.s32.totalorder %s890_s20, 3 }
   0x5   : > { %s1034_s21 = smov (%p29_p1, %s27_s21), 0  ;;  %p226_p3 = pnand %p713_p0, %p225_p2 }
   0x6   : > { %v847_v0 = vld [vmem:[%s1027_s2] sm:$0xff] (!%p226_p3)   ;;  %v848_v1 = vld [vmem:[%s1027_s2 + $0x8] sm:$0xff] (!%p226_p3)   ;;  %v892_v2 = vmov (!%p226_p3), 0.0   ;;  %p271_p4 = scmp.lt.s32.totalorder (!%p226_p3), %s882_s18, 1  ;;  %vm893_vm0 = vmmov (!%p226_p3), 0   ;;  %v849_v4 = vld [vmem:[%s1027_s2 + $0x10] sm:$0xff] (!%p226_p3)  }
   0x7   : > { %229 = sbr.rel (%p226_p3) target bundleno = 275 (0x113), region = 40  ;;  %801 = vmatprep.subr.bf16.mxu1 (!%p226_p3), %v892_v2  ;;  %777 = vmatprep.subr.bf16.mxu0 (!%p226_p3), %v847_v0  ;;  %v850_v3 = vld [vmem:[%s1028_s3] sm:$0xff] (!%p226_p3)   ;;  %v852_v5 = vld [vmem:[%s1028_s3 + $0x8] sm:$0xff] (!%p226_p3)   ;;  %v851_v6 = vld [vmem:[%s1027_s2 + $0x18] sm:$0xff] (!%p226_p3)  }
   0x8   : > { %778 = vmatpush3.bf16.msra.mxu0 (!%p226_p3), %v847_v0  ;;  %817 = vmatprep.mubr.msk.bf16.mxu1 (!%p226_p3), %vm893_vm0, %v892_v2  ;;  %v854_v7 = vld [vmem:[%s1028_s3 + $0x10] sm:$0xff] (!%p226_p3)   ;;  %v853_v8 = vld [vmem:[%s1027_s2 + $0x20] sm:$0xff] (!%p226_p3)   ;;  %v856_v9 = vld [vmem:[%s1028_s3 + $0x18] sm:$0xff] (!%p226_p3)  }
   0x9   : > { %779 = vmatprep.subr.bf16.mxu0 (!%p226_p3), %v848_v1  ;;  %802 = vmatpush3.bf16.msra.mxu1 (!%p226_p3), %v850_v3  ;;  %v855_v11 = vld [vmem:[%s1027_s2 + $0x28] sm:$0xff] (!%p226_p3)   ;;  %v858_v12 = vld [vmem:[%s1028_s3 + $0x20] sm:$0xff] (!%p226_p3)   ;;  %v857_v13 = vld [vmem:[%s1027_s2 + $0x30] sm:$0xff] (!%p226_p3)  }
   0xa   : > { %803 = vmatprep.subr.bf16.mxu1 (!%p226_p3), %v892_v2  ;;  %v860_v14 = vld [vmem:[%s1028_s3 + $0x28] sm:$0xff] (!%p226_p3)   ;;  %v859_v15 = vld [vmem:[%s1027_s2 + $0x38] sm:$0xff] (!%p226_p3)   ;;  %v863_v16 = vld [vmem:[%s1028_s3 + $0x30] sm:$0xff] (!%p226_p3)  }
   0xb   : > { %v864_v17 = vld [vmem:[%s1028_s3 + $0x38] sm:$0xff] (!%p226_p3)   ;;  %v732_v32 = vld [vmem:[%s1029_s4] ss:$0 sm:$0xff] (!%p226_p3) }
   0xc   : > { %780 = vmatpush3.bf16.msra.mxu0 (!%p226_p3), %v848_v1 }
   0xd   : > { %781 = vmatprep.subr.bf16.mxu0 (!%p226_p3), %v849_v4  ;;  %804 = vmatpush3.bf16.msra.mxu1 (!%p226_p3), %v852_v5 }
   0xe   : > { %s1036_s18 = smov (!%p271_p4, %s882_s18), 1  ;;  %805 = vmatprep.subr.bf16.mxu1 %v892_v2 }
   0xf   : > { %s746_s9 = sshll.u32 %s1036_s18, 5  ;;  %s747_s25 = sshll.u32 %s1036_s18, 3 }
  0x10   : > { %782 = vmatpush3.bf16.msra.mxu0 %v849_v4  ;;  %s969_s14 = scalar_lea.vmem %s1025_s0, %s746_s9  ;;  %s288_s30 = scalar_lea.vmem %s1026_s1, %s747_s25 }
  0x11   : > { %783 = vmatprep.subr.bf16.mxu0 %v851_v6  ;;  %806 = vmatpush3.bf16.msra.mxu1 %v854_v7  ;;  %v861_v10 = vld [vmem:[%s969_s14] sm:$0xff]   ;;  %v862_v18 = vld [vmem:[%s969_s14 + $0x8] sm:$0xff]   ;;  %v865_v19 = vld [vmem:[%s969_s14 + $0x10] sm:$0xff]   ;;  %s298_s24 = scalar_lea.vmem %s1030_s5, %s747_s25 }
  0x12   : > { %807 = vmatprep.subr.bf16.mxu1 %v892_v2  ;;  %793 = vmatprep.mubr.bf16.mxu0 %v861_v10  ;;  %v867_v20 = vld [vmem:[%s288_s30] sm:$0xff]   ;;  %v866_v21 = vld [vmem:[%s969_s14 + $0x18] sm:$0xff]  }
  0x14   : > { %784 = vmatpush3.bf16.msra.mxu0 %v851_v6 }
  0x15   : > { %785 = vmatprep.subr.bf16.mxu0 %v853_v8  ;;  %808 = vmatpush3.bf16.msra.mxu1 %v856_v9 }
  0x16   : > { %809 = vmatprep.subr.bf16.mxu1 %v892_v2 }
  0x18   : > { %786 = vmatpush3.bf16.msra.mxu0 %v853_v8 }
  0x19   : > { %787 = vmatprep.subr.bf16.mxu0 %v855_v11  ;;  %810 = vmatpush3.bf16.msra.mxu1 %v858_v12 }
  0x1a   : > { %811 = vmatprep.subr.bf16.mxu1 %v892_v2 }
  0x1c   : > { %788 = vmatpush3.bf16.msra.mxu0 %v855_v11 }
  0x1d   : > { %789 = vmatprep.subr.bf16.mxu0 %v857_v13  ;;  %812 = vmatpush3.bf16.msra.mxu1 %v860_v14 }
  0x1e   : > { %813 = vmatprep.subr.bf16.mxu1 %v892_v2 }
  0x20   : > { %790 = vmatpush3.bf16.msra.mxu0 %v857_v13 }
  0x21   : > { %791 = vmatprep.subr.bf16.mxu0 %v859_v15  ;;  %814 = vmatpush3.bf16.msra.mxu1 %v863_v16 }
  0x22   : > { %815 = vmatprep.subr.bf16.mxu1 %v892_v2 }
  0x24   : > { %792 = vmatpush3.bf16.msra.mxu0 %v859_v15 }
  0x25   : > { %816 = vmatpush3.bf16.msra.mxu1 %v864_v17 }
  0x27   : > { %794 = vmatmul.mubr.bf16.vlgmr.msra.gmra.mrb[0].mxu0 %v862_v18 }
  0x28   : > { %797 = vmatprep.mubr.bf16.mxu0 %v865_v19  ;;  %818 = vmatmul.mubr.bf16.vlgmr.msra.gmra.mrb[0].mxu1 %v867_v20 }
  0x2f   : > { %798 = vmatmul.mubr.bf16.gmra.mrb[4].mxu0 %v866_v21 }
  0xfa   : > { %v795_v22 = vpop.f32.mrb[0].mxu0 }
  0xfb   : > { %v431_v23 = vpop.f32.mrb[1].mxu0  ;;  %v581_v26 = vpop.f32.mrb[0].mxu1 }
  0xfc   : > { %v462_v24 = vmax.f32 %v431_v23, %v795_v22  ;;  %v796_v25 = vpop.f32.mrb[2].mxu0  ;;  %v819_v28 = vpop.f32.mrb[1].mxu1  ;;  %v582_v35 = vadd.f32 %v732_v32, %v581_v26 }
  0xfd   : > { %v434_v27 = vpop.f32.mrb[3].mxu0  ;;  %v584_v30 = vpop.f32.mrb[2].mxu1 }
  0xfe   : > { %v463_v29 = vmax.f32 %v434_v27, %v796_v25  ;;  %v820_v31 = vpop.f32.mrb[3].mxu1  ;;  %v585_v42 = vadd.f32 %v732_v32, %v584_v30 }
 0x102   : > { %v799_v33 = vpop.f32.mrb[4].mxu0 }
 0x103   : > { %v447_v34 = vpop.f32.mrb[5].mxu0 }
 0x104   : > { %v464_v36 = vmax.f32 %v462_v24, %v447_v34  ;;  %v800_v37 = vpop.f32.mrb[6].mxu0 }
 0x105   : > { %v450_v38 = vpop.f32.mrb[7].mxu0 }
 0x106   : > { %v466_v39 = vmax.f32 %v464_v36, %v799_v33  ;;  %v465_v40 = vmax.f32 %v463_v29, %v450_v38 }
 0x108   : > { %v588_v41 = vadd.f32 %v582_v35, %v466_v39  ;;  %v467_v43 = vmax.f32 %v465_v40, %v800_v37 }
 0x10a   : > { %v590_v44 = vmul.f32 0.2, %v588_v41  ;;  %v589_v45 = vadd.f32 %v585_v42, %v467_v43 }
 0x10c   : > { %v591_v46 = vmul.f32 0.2, %v589_v45  ;;  %v592_v47 = vmax.f32 %v588_v41, %v590_v44 }
 0x10e   : > { %v593_v48 = vmax.f32 %v589_v45, %v591_v46 }
 0x110   : > { %v754_v49 = vpack.c.bf16 %v593_v48, %v592_v47 }
 0x112   : > { %755 = vst [vmem:[%s298_s24] sm:$0xff] %v754_v49  }
 0x113 PF: > { %s15_s20 = sadd.s32 1, %s890_s20   ;;  %s1031_s18 = smov %s886_s19 }
 0x114   : > { %p12_p5 = scmp.ge.s32.totalorder %s15_s20, 4   ;;  %s1032_s19 = smov %s1034_s21 }
 0x116   :  { %14 = sbr.rel (!%p12_p5) target bundleno = 2 (0x2), region = 73 }

</bundles_post_ra>
